<compile_context>
chip_gen: v7x
topology: tpu7x:2x2x1
jax: 0.10.0
libtpu: 0.0.40
codegen_flags: <defaults>
</compile_context>

<pallas_src>
import functools

import jax
import jax.numpy as jnp
from jax.experimental import pallas as pl
from jax.experimental.pallas import tpu as pltpu

NH = 512            # hidden width (fixed in the PyTorch module)
EPS = 1e-5          # BatchNorm2d default eps
SLOPE = 0.01        # LeakyReLU default negative_slope
LANE = 128          # TPU lane width
BF16_SUBLANE = 16   # rows per packed bf16 sublane tile (MXU LHS packing)


def _round_up(n, m):
    return ((n + m - 1) // m) * m


def _full_spec(arr):
    nd = arr.ndim
    # Whole-array block (last two dims equal the full array dims -> allowed).
    return pl.BlockSpec(arr.shape, lambda: (0,) * nd)


def disc_conv_kernel(x_ref, w1_ref, bn_ref, w23_hbm, w4_hbm, b4_ref,
                     o_ref,
                     w2_buf, w3_buf, w4_buf, sem,
                     *, n_true, needs_mask):
    n_pad = x_ref.shape[0]
    inv_n = jnp.float32(1.0 / n_true)

    # Kick off HBM -> VMEM fetches for the later layers' weights immediately so
    # they overlap with the layer-1 matmul / BN (only x, w1, bn, b4 are
    # auto-copied VMEM inputs that must land before the body starts).
    cp2 = pltpu.make_async_copy(w23_hbm.at[0], w2_buf, sem.at[0]); cp2.start()
    cp3 = pltpu.make_async_copy(w23_hbm.at[1], w3_buf, sem.at[1]); cp3.start()
    cp4 = pltpu.make_async_copy(w4_hbm, w4_buf, sem.at[2]); cp4.start()

    if needs_mask:
        # Zero-padded batch rows must not pollute the BN statistics.
        row_ids = jax.lax.broadcasted_iota(jnp.int32, (n_pad, 1), 0)
        mask = (row_ids < n_true).astype(jnp.float32)

    def bn_lrelu(h, layer, mask_stats):
        # Training-mode BatchNorm2d: single-pass batch stats (biased variance,
        # divisor = true batch size), fused per-channel scale/shift, then
        # LeakyReLU(0.01) in max form.  All elementwise math in f32.
        if mask_stats:
            hm = h * mask
            s1 = jnp.sum(hm, axis=0, keepdims=True)
            s2 = jnp.sum(hm * h, axis=0, keepdims=True)
        else:
            s1 = jnp.sum(h, axis=0, keepdims=True)
            s2 = jnp.sum(h * h, axis=0, keepdims=True)
        mean = s1 * inv_n
        var = jnp.maximum(s2 * inv_n - mean * mean, 0.0)   # cancellation guard
        gamma = bn_ref[2 * layer:2 * layer + 1, :]
        beta = bn_ref[2 * layer + 1:2 * layer + 2, :]
        scale = gamma * jax.lax.rsqrt(var + EPS)            # (1, 512), EUP rsqrt
        shift = beta - mean * scale
        hn = h * scale + shift                              # 2 VPU ops / element
        return jnp.maximum(hn, SLOPE * hn)                  # LeakyReLU, 0 < slope < 1

    # Layer 1: conv bias elided (exactly cancelled by the following BN's mean
    # subtraction).  Bias-free zero-padded x rows give exactly-zero rows of h,
    # so layer-1 stats never need the row mask.
    h = jnp.dot(x_ref[...], w1_ref[...], preferred_element_type=jnp.float32)
    h = bn_lrelu(h, 0, mask_stats=False)

    # Layer 2 (wait hides behind layer-1 compute).
    cp2.wait()
    h = jnp.dot(h.astype(jnp.bfloat16), w2_buf[...],
                preferred_element_type=jnp.float32)
    h = bn_lrelu(h, 1, mask_stats=needs_mask)

    # Layer 3.
    cp3.wait()
    h = jnp.dot(h.astype(jnp.bfloat16), w3_buf[...],
                preferred_element_type=jnp.float32)
    h = bn_lrelu(h, 2, mask_stats=needs_mask)

    # nnSqueeze is a pure shape op ((N, 512, 1, 1) -> (N, 512)); already flat.
    # Output block is lane-padded to a multiple of 128 -> unmasked dense stores.
    cp4.wait()
    o_ref[...] = (jnp.dot(h.astype(jnp.bfloat16), w4_buf[...],
                          preferred_element_type=jnp.float32) + b4_ref[...])


def disc_conv_forward(x_nchw, params):
    """params: dict of f32 arrays (see init_params). x_nchw: (N, nin, 1, 1)."""
    N, C, H, W = x_nchw.shape
    assert H == 1 and W == 1, "DiscConv forward requires 1x1 spatial (squeeze->Linear)"
    nout = params["w4"].shape[1]

    n_pad = _round_up(max(N, BF16_SUBLANE), BF16_SUBLANE)  # packed bf16 LHS tiles
    c_pad = _round_up(C, LANE)                             # lane-dense contraction
    nout_pad = _round_up(nout, LANE)                       # lane-dense output

    # Flatten NCHW -> (N, C), zero-pad batch + channel dims, cast to bf16 for MXU.
    x = x_nchw.reshape(N, C).astype(jnp.float32)
    x = jnp.pad(x, ((0, n_pad - N), (0, c_pad - C))).astype(jnp.bfloat16)

    # Conv/Linear weights pre-transposed to (in, out); matmul operands in bf16.
    # Zero-padding contraction / output dims does not change the matmul result.
    w1 = jnp.pad(params["w1"], ((0, c_pad - C), (0, 0))).astype(jnp.bfloat16)
    w23 = jnp.stack([params["w2"], params["w3"]]).astype(jnp.bfloat16)  # one HBM arg
    w4 = jnp.pad(params["w4"], ((0, 0), (0, nout_pad - nout))).astype(jnp.bfloat16)
    b4 = jnp.pad(params["b4"], ((0, 0), (0, nout_pad - nout)))

    # b1/b2/b3 are intentionally not shipped: a per-channel bias immediately
    # before a training-mode BatchNorm is exactly cancelled by mean subtraction.
    # All six BN gammas/betas packed into one sublane-full (8, 512) f32 input.
    bn = jnp.concatenate([params["g1"], params["be1"],
                          params["g2"], params["be2"],
                          params["g3"], params["be3"],
                          jnp.zeros((2, NH), jnp.float32)], axis=0)

    vmem_args = (x, w1, bn, b4)            # auto-copied into VMEM by Pallas
    hbm_args = (w23, w4)                   # stay in HBM; manual DMA in-kernel
    args = (x, w1, bn, w23, w4, b4)

    # VMEM budget: with an empty grid there is no pipelining, so count operands,
    # output and scratch once, plus a few live (n_pad, 512) activation temps.
    vmem_input_bytes = sum(int(a.size) * a.dtype.itemsize for a in vmem_args)
    scratch_bytes = (2 * NH * NH + NH * nout_pad) * 2      # bf16 weight buffers
    out_bytes = n_pad * nout_pad * 4
    act_bytes = 4 * n_pad * NH * 4
    vmem_needed = vmem_input_bytes + scratch_bytes + out_bytes + act_bytes + (2 << 20)

    # Generation-aware cap: 128 MiB on v5e/v6e, 64 MiB on v7x; leave ~12 MiB
    # headroom for compiler scratch.
    try:
        vmem_cap = int(pltpu.get_tpu_info().vmem_capacity_bytes)
    except Exception:  # conservative fallback (v7x per-core)
        vmem_cap = 64 << 20
    cap_limit = max(vmem_cap - (12 << 20), 16 << 20)
    vmem_limit = int(min(max(vmem_needed, 16 << 20), cap_limit))

    hbm_bytes = sum(int(a.size) * a.dtype.itemsize for a in hbm_args)
    flops = 2 * n_pad * (c_pad * NH + 2 * NH * NH + NH * nout_pad)
    cost = pl.CostEstimate(flops=int(flops),
                           transcendentals=3 * NH,          # rsqrt per BN channel
                           bytes_accessed=int(vmem_input_bytes + hbm_bytes + out_bytes))

    out = pl.pallas_call(
        functools.partial(disc_conv_kernel, n_true=N, needs_mask=(n_pad != N)),
        out_shape=jax.ShapeDtypeStruct((n_pad, nout_pad), jnp.float32),
        in_specs=[
            _full_spec(x), _full_spec(w1), _full_spec(bn),
            pl.BlockSpec(memory_space=pl.ANY),      # w23: stays in HBM
            pl.BlockSpec(memory_space=pl.ANY),      # w4:  stays in HBM
            _full_spec(b4),
        ],
        out_specs=pl.BlockSpec((n_pad, nout_pad), lambda: (0, 0)),
        scratch_shapes=[
            pltpu.VMEM((NH, NH), jnp.bfloat16),     # w2 landing buffer
            pltpu.VMEM((NH, NH), jnp.bfloat16),     # w3 landing buffer
            pltpu.VMEM((NH, nout_pad), jnp.bfloat16),
            pltpu.SemaphoreType.DMA((3,)),
        ],
        compiler_params=pltpu.CompilerParams(vmem_limit_bytes=vmem_limit),
        cost_estimate=cost,
    )(*args)

    # Strip the lane/sublane padding back off.
    return out[:N, :nout]


def init_params(key, nin, nout):
    """Deterministic synthetic parameters matching the PyTorch module's shapes.
    Conv weights (out, in, 1, 1) are stored pre-transposed as (in, out) so the
    kernel does x @ W without an in-kernel transpose.  b1/b2/b3 are kept for
    module fidelity but are exactly cancelled by training-mode BN and therefore
    never shipped to the kernel."""
    ks = jax.random.split(key, 8)
    p = {
        # Conv2d(nin, 512, 1): weight (512, nin, 1, 1) -> (nin, 512); bias (512,)
        "w1": jax.random.normal(ks[0], (nin, NH), jnp.float32) * 0.05,
        "b1": jax.random.normal(ks[1], (1, NH), jnp.float32) * 0.05,
        # BatchNorm2d(512): gamma=1, beta=0 (PyTorch default init)
        "g1": jnp.ones((1, NH), jnp.float32),
        "be1": jnp.zeros((1, NH), jnp.float32),
        # Conv2d(512, 512, 1)
        "w2": jax.random.normal(ks[2], (NH, NH), jnp.float32) * 0.02,
        "b2": jax.random.normal(ks[3], (1, NH), jnp.float32) * 0.05,
        "g2": jnp.ones((1, NH), jnp.float32),
        "be2": jnp.zeros((1, NH), jnp.float32),
        # Conv2d(512, 512, 1)
        "w3": jax.random.normal(ks[4], (NH, NH), jnp.float32) * 0.02,
        "b3": jax.random.normal(ks[5], (1, NH), jnp.float32) * 0.05,
        "g3": jnp.ones((1, NH), jnp.float32),
        "be3": jnp.zeros((1, NH), jnp.float32),
        # Linear(512, nout): weight (nout, 512) -> (512, nout); bias (nout,)
        "w4": jax.random.normal(ks[6], (NH, nout), jnp.float32) * 0.02,
        "b4": jax.random.normal(ks[7], (1, nout), jnp.float32) * 0.05,
    }
    return p


def _reference(x_nchw, p):
    # Precision-matched plain-JAX reference (bf16 matmul operands, f32 MXU
    # accumulation, single-pass batch stats, fused BN affine, max-form LReLU).
    # Conv biases dropped exactly as in the kernel: adding a per-channel bias
    # right before training-mode BatchNorm is a no-op in exact arithmetic.
    N, C, _, _ = x_nchw.shape
    h = x_nchw.reshape(N, C).astype(jnp.float32)

    def mm(a, w):
        return jnp.dot(a.astype(jnp.bfloat16), w.astype(jnp.bfloat16),
                       preferred_element_type=jnp.float32)

    def bn_lrelu(h, g, b):
        mean = jnp.mean(h, axis=0, keepdims=True)
        var = jnp.maximum(jnp.mean(h * h, axis=0, keepdims=True) - mean * mean, 0.0)
        scale = g * jax.lax.rsqrt(var + EPS)
        shift = b - mean * scale
        hn = h * scale + shift
        return jnp.maximum(hn, SLOPE * hn)

    h = bn_lrelu(mm(h, p["w1"]), p["g1"], p["be1"])
    h = bn_lrelu(mm(h, p["w2"]), p["g2"], p["be2"])
    h = bn_lrelu(mm(h, p["w3"]), p["g3"], p["be3"])
    return mm(h, p["w4"]) + p["b4"]


if __name__ == "__main__":
    key = jax.random.PRNGKey(0)
    k_x, k_p = jax.random.split(key)

    N, nin, nout = 4, 4, 3
    # NCHW, spatial 1x1 (the only shape for which the PyTorch forward is valid).
    x = jax.random.normal(k_x, (N, nin, 1, 1), jnp.float32)
    params = init_params(k_p, nin, nout)

    out = disc_conv_forward(x, params)
    out = jax.block_until_ready(out)

    ref = _reference(x, params)
    assert out.shape == (N, nout)
    assert jnp.allclose(out, ref, atol=1e-2, rtol=1e-2), "mismatch vs reference"

    print("KERNEL_OK")
</pallas_src>

<mosaic_0001>
module attributes {stable_mosaic.version = 11 : i64} {
  func.func @disc_conv_kernel(%arg0: memref<16x128xbf16, #tpu.memory_space<vmem>>, %arg1: memref<128x512xbf16, #tpu.memory_space<vmem>>, %arg2: memref<8x512xf32, #tpu.memory_space<vmem>>, %arg3: memref<2x512x512xbf16, #tpu.memory_space<any>>, %arg4: memref<512x128xbf16, #tpu.memory_space<any>>, %arg5: memref<1x128xf32, #tpu.memory_space<vmem>>, %arg6: memref<16x128xf32, #tpu.memory_space<vmem>>, %arg7: memref<512x512xbf16, #tpu.memory_space<vmem>>, %arg8: memref<512x512xbf16, #tpu.memory_space<vmem>>, %arg9: memref<512x128xbf16, #tpu.memory_space<vmem>>, %arg10: memref<3x!tpu.dma_semaphore, #tpu.memory_space<semaphore_mem>>) attributes {dimension_semantics = [], scalar_prefetch = 0 : i64, scratch_operands = 4 : i64, tpu.core_type = #tpu.core_type<tc>} {
    %c0_i32 = arith.constant 0 : i32
    %c0_i32_0 = arith.constant 0 : i32
    %c0_i32_1 = arith.constant 0 : i32
    %c0_i32_2 = arith.constant 0 : i32
    %0 = tpu.memref_slice %arg3[%c0_i32, %c0_i32_1, %c0_i32_2] : memref<2x512x512xbf16, #tpu.memory_space<any>> -> memref<1x512x512xbf16, #tpu.memory_space<any>>
    %1 = tpu.memref_squeeze %0 : memref<1x512x512xbf16, #tpu.memory_space<any>> -> memref<512x512xbf16, #tpu.memory_space<any>>
    %2 = tpu.memref_slice %arg10[%c0_i32_0] : memref<3x!tpu.dma_semaphore, #tpu.memory_space<semaphore_mem>> -> memref<1x!tpu.dma_semaphore, #tpu.memory_space<semaphore_mem>>
    %3 = tpu.memref_squeeze %2 : memref<1x!tpu.dma_semaphore, #tpu.memory_space<semaphore_mem>> -> memref<!tpu.dma_semaphore, #tpu.memory_space<semaphore_mem>>
    tpu.enqueue_dma source(%1 : memref<512x512xbf16, #tpu.memory_space<any>>) target(%arg7 : memref<512x512xbf16, #tpu.memory_space<vmem>>) target_semaphore(%3 : memref<!tpu.dma_semaphore, #tpu.memory_space<semaphore_mem>>)
    %c1_i32 = arith.constant 1 : i32
    %c1_i32_3 = arith.constant 1 : i32
    %c0_i32_4 = arith.constant 0 : i32
    %c0_i32_5 = arith.constant 0 : i32
    %4 = tpu.memref_slice %arg3[%c1_i32, %c0_i32_4, %c0_i32_5] : memref<2x512x512xbf16, #tpu.memory_space<any>> -> memref<1x512x512xbf16, #tpu.memory_space<any>>
    %5 = tpu.memref_squeeze %4 : memref<1x512x512xbf16, #tpu.memory_space<any>> -> memref<512x512xbf16, #tpu.memory_space<any>>
    %6 = tpu.memref_slice %arg10[%c1_i32_3] : memref<3x!tpu.dma_semaphore, #tpu.memory_space<semaphore_mem>> -> memref<1x!tpu.dma_semaphore, #tpu.memory_space<semaphore_mem>>
    %7 = tpu.memref_squeeze %6 : memref<1x!tpu.dma_semaphore, #tpu.memory_space<semaphore_mem>> -> memref<!tpu.dma_semaphore, #tpu.memory_space<semaphore_mem>>
    tpu.enqueue_dma source(%5 : memref<512x512xbf16, #tpu.memory_space<any>>) target(%arg8 : memref<512x512xbf16, #tpu.memory_space<vmem>>) target_semaphore(%7 : memref<!tpu.dma_semaphore, #tpu.memory_space<semaphore_mem>>)
    %c2_i32 = arith.constant 2 : i32
    %8 = tpu.memref_slice %arg10[%c2_i32] : memref<3x!tpu.dma_semaphore, #tpu.memory_space<semaphore_mem>> -> memref<1x!tpu.dma_semaphore, #tpu.memory_space<semaphore_mem>>
    %9 = tpu.memref_squeeze %8 : memref<1x!tpu.dma_semaphore, #tpu.memory_space<semaphore_mem>> -> memref<!tpu.dma_semaphore, #tpu.memory_space<semaphore_mem>>
    tpu.enqueue_dma source(%arg4 : memref<512x128xbf16, #tpu.memory_space<any>>) target(%arg9 : memref<512x128xbf16, #tpu.memory_space<vmem>>) target_semaphore(%9 : memref<!tpu.dma_semaphore, #tpu.memory_space<semaphore_mem>>)
    %10 = tpu.iota {dimensions = array<i32: 0>} : vector<16x1xi32>
    %c4_i32 = arith.constant 4 : i32
    %11 = vector.broadcast %c4_i32 : i32 to vector<16x1xi32>
    %12 = arith.cmpi slt, %10, %11 : vector<16x1xi32>
    %13 = arith.extui %12 : vector<16x1xi1> to vector<16x1xi32>
    %14 = arith.sitofp %13 : vector<16x1xi32> to vector<16x1xf32>
    %c0 = arith.constant 0 : index
    %c0_6 = arith.constant 0 : index
    %15 = vector.load %arg0[%c0, %c0_6] : memref<16x128xbf16, #tpu.memory_space<vmem>>, vector<16x128xbf16>
    %c0_7 = arith.constant 0 : index
    %c0_8 = arith.constant 0 : index
    %16 = vector.load %arg1[%c0_7, %c0_8] : memref<128x512xbf16, #tpu.memory_space<vmem>>, vector<128x512xbf16>
    %cst = arith.constant dense<0.000000e+00> : vector<16x512xf32>
    %17 = tpu.matmul %15, %16, %cst {dimension_numbers = #tpu.dot_dimension_numbers<[1], [0], [0], [1], [0, 0, 1, 1], [], []>} : vector<16x128xbf16>, vector<128x512xbf16>, vector<16x512xf32> -> vector<16x512xf32>
    %cst_9 = arith.constant dense<0.000000e+00> : vector<512xf32>
    %18 = vector.multi_reduction <add>, %17, %cst_9 [0] : vector<16x512xf32> to vector<512xf32>
    %19 = vector.shape_cast %18 : vector<512xf32> to vector<1x512xf32>
    %20 = arith.mulf %17, %17 : vector<16x512xf32>
    %cst_10 = arith.constant dense<0.000000e+00> : vector<512xf32>
    %21 = vector.multi_reduction <add>, %20, %cst_10 [0] : vector<16x512xf32> to vector<512xf32>
    %22 = vector.shape_cast %21 : vector<512xf32> to vector<1x512xf32>
    %cst_11 = arith.constant 2.500000e-01 : f32
    %23 = vector.broadcast %cst_11 : f32 to vector<1x512xf32>
    %24 = arith.mulf %19, %23 : vector<1x512xf32>
    %cst_12 = arith.constant 2.500000e-01 : f32
    %25 = vector.broadcast %cst_12 : f32 to vector<1x512xf32>
    %26 = arith.mulf %22, %25 : vector<1x512xf32>
    %27 = arith.mulf %24, %24 : vector<1x512xf32>
    %28 = arith.subf %26, %27 : vector<1x512xf32>
    %cst_13 = arith.constant 0.000000e+00 : f32
    %29 = vector.broadcast %cst_13 : f32 to vector<1x512xf32>
    %30 = arith.maximumf %28, %29 : vector<1x512xf32>
    %c0_14 = arith.constant 0 : index
    %c0_15 = arith.constant 0 : index
    %31 = vector.load %arg2[%c0_14, %c0_15] : memref<8x512xf32, #tpu.memory_space<vmem>>, vector<1x512xf32>
    %c1 = arith.constant 1 : index
    %c0_16 = arith.constant 0 : index
    %32 = vector.load %arg2[%c1, %c0_16] : memref<8x512xf32, #tpu.memory_space<vmem>>, vector<1x512xf32>
    %cst_17 = arith.constant 9.99999974E-6 : f32
    %33 = vector.broadcast %cst_17 : f32 to vector<1x512xf32>
    %34 = arith.addf %30, %33 : vector<1x512xf32>
    %35 = math.rsqrt %34 : vector<1x512xf32>
    %36 = arith.mulf %31, %35 : vector<1x512xf32>
    %37 = arith.mulf %24, %36 : vector<1x512xf32>
    %38 = arith.subf %32, %37 : vector<1x512xf32>
    %39 = vector.broadcast %36 : vector<1x512xf32> to vector<16x512xf32>
    %40 = arith.mulf %17, %39 : vector<16x512xf32>
    %41 = vector.broadcast %38 : vector<1x512xf32> to vector<16x512xf32>
    %42 = arith.addf %40, %41 : vector<16x512xf32>
    %cst_18 = arith.constant 0.00999999977 : f32
    %43 = vector.broadcast %cst_18 : f32 to vector<16x512xf32>
    %44 = arith.mulf %43, %42 : vector<16x512xf32>
    %45 = arith.maximumf %42, %44 : vector<16x512xf32>
    %c0_i32_19 = arith.constant 0 : i32
    %c0_i32_20 = arith.constant 0 : i32
    %c0_i32_21 = arith.constant 0 : i32
    %c0_i32_22 = arith.constant 0 : i32
    %46 = tpu.memref_slice %arg3[%c0_i32_19, %c0_i32_21, %c0_i32_22] : memref<2x512x512xbf16, #tpu.memory_space<any>> -> memref<1x512x512xbf16, #tpu.memory_space<any>>
    %47 = tpu.memref_squeeze %46 : memref<1x512x512xbf16, #tpu.memory_space<any>> -> memref<512x512xbf16, #tpu.memory_space<any>>
    %48 = tpu.memref_slice %arg10[%c0_i32_20] : memref<3x!tpu.dma_semaphore, #tpu.memory_space<semaphore_mem>> -> memref<1x!tpu.dma_semaphore, #tpu.memory_space<semaphore_mem>>
    %49 = tpu.memref_squeeze %48 : memref<1x!tpu.dma_semaphore, #tpu.memory_space<semaphore_mem>> -> memref<!tpu.dma_semaphore, #tpu.memory_space<semaphore_mem>>
    tpu.wait_dma2 semaphore(%49 : memref<!tpu.dma_semaphore, #tpu.memory_space<semaphore_mem>>) src(%47 : memref<512x512xbf16, #tpu.memory_space<any>>) dst(%arg7 : memref<512x512xbf16, #tpu.memory_space<vmem>>)
    %50 = arith.truncf %45 : vector<16x512xf32> to vector<16x512xbf16>
    %c0_23 = arith.constant 0 : index
    %c0_24 = arith.constant 0 : index
    %51 = vector.load %arg7[%c0_23, %c0_24] : memref<512x512xbf16, #tpu.memory_space<vmem>>, vector<512x512xbf16>
    %cst_25 = arith.constant dense<0.000000e+00> : vector<16x512xf32>
    %52 = tpu.matmul %50, %51, %cst_25 {dimension_numbers = #tpu.dot_dimension_numbers<[1], [0], [0], [1], [0, 0, 1, 1], [], []>} : vector<16x512xbf16>, vector<512x512xbf16>, vector<16x512xf32> -> vector<16x512xf32>
    %53 = vector.broadcast %14 : vector<16x1xf32> to vector<16x512xf32>
    %54 = arith.mulf %52, %53 : vector<16x512xf32>
    %cst_26 = arith.constant dense<0.000000e+00> : vector<512xf32>
    %55 = vector.multi_reduction <add>, %54, %cst_26 [0] : vector<16x512xf32> to vector<512xf32>
    %56 = vector.shape_cast %55 : vector<512xf32> to vector<1x512xf32>
    %57 = arith.mulf %54, %52 : vector<16x512xf32>
    %cst_27 = arith.constant dense<0.000000e+00> : vector<512xf32>
    %58 = vector.multi_reduction <add>, %57, %cst_27 [0] : vector<16x512xf32> to vector<512xf32>
    %59 = vector.shape_cast %58 : vector<512xf32> to vector<1x512xf32>
    %cst_28 = arith.constant 2.500000e-01 : f32
    %60 = vector.broadcast %cst_28 : f32 to vector<1x512xf32>
    %61 = arith.mulf %56, %60 : vector<1x512xf32>
    %cst_29 = arith.constant 2.500000e-01 : f32
    %62 = vector.broadcast %cst_29 : f32 to vector<1x512xf32>
    %63 = arith.mulf %59, %62 : vector<1x512xf32>
    %64 = arith.mulf %61, %61 : vector<1x512xf32>
    %65 = arith.subf %63, %64 : vector<1x512xf32>
    %cst_30 = arith.constant 0.000000e+00 : f32
    %66 = vector.broadcast %cst_30 : f32 to vector<1x512xf32>
    %67 = arith.maximumf %65, %66 : vector<1x512xf32>
    %c2 = arith.constant 2 : index
    %c0_31 = arith.constant 0 : index
    %68 = vector.load %arg2[%c2, %c0_31] : memref<8x512xf32, #tpu.memory_space<vmem>>, vector<1x512xf32>
    %c3 = arith.constant 3 : index
    %c0_32 = arith.constant 0 : index
    %69 = vector.load %arg2[%c3, %c0_32] : memref<8x512xf32, #tpu.memory_space<vmem>>, vector<1x512xf32>
    %cst_33 = arith.constant 9.99999974E-6 : f32
    %70 = vector.broadcast %cst_33 : f32 to vector<1x512xf32>
    %71 = arith.addf %67, %70 : vector<1x512xf32>
    %72 = math.rsqrt %71 : vector<1x512xf32>
    %73 = arith.mulf %68, %72 : vector<1x512xf32>
    %74 = arith.mulf %61, %73 : vector<1x512xf32>
    %75 = arith.subf %69, %74 : vector<1x512xf32>
    %76 = vector.broadcast %73 : vector<1x512xf32> to vector<16x512xf32>
    %77 = arith.mulf %52, %76 : vector<16x512xf32>
    %78 = vector.broadcast %75 : vector<1x512xf32> to vector<16x512xf32>
    %79 = arith.addf %77, %78 : vector<16x512xf32>
    %cst_34 = arith.constant 0.00999999977 : f32
    %80 = vector.broadcast %cst_34 : f32 to vector<16x512xf32>
    %81 = arith.mulf %80, %79 : vector<16x512xf32>
    %82 = arith.maximumf %79, %81 : vector<16x512xf32>
    %c1_i32_35 = arith.constant 1 : i32
    %c1_i32_36 = arith.constant 1 : i32
    %c0_i32_37 = arith.constant 0 : i32
    %c0_i32_38 = arith.constant 0 : i32
    %83 = tpu.memref_slice %arg3[%c1_i32_35, %c0_i32_37, %c0_i32_38] : memref<2x512x512xbf16, #tpu.memory_space<any>> -> memref<1x512x512xbf16, #tpu.memory_space<any>>
    %84 = tpu.memref_squeeze %83 : memref<1x512x512xbf16, #tpu.memory_space<any>> -> memref<512x512xbf16, #tpu.memory_space<any>>
    %85 = tpu.memref_slice %arg10[%c1_i32_36] : memref<3x!tpu.dma_semaphore, #tpu.memory_space<semaphore_mem>> -> memref<1x!tpu.dma_semaphore, #tpu.memory_space<semaphore_mem>>
    %86 = tpu.memref_squeeze %85 : memref<1x!tpu.dma_semaphore, #tpu.memory_space<semaphore_mem>> -> memref<!tpu.dma_semaphore, #tpu.memory_space<semaphore_mem>>
    tpu.wait_dma2 semaphore(%86 : memref<!tpu.dma_semaphore, #tpu.memory_space<semaphore_mem>>) src(%84 : memref<512x512xbf16, #tpu.memory_space<any>>) dst(%arg8 : memref<512x512xbf16, #tpu.memory_space<vmem>>)
    %87 = arith.truncf %82 : vector<16x512xf32> to vector<16x512xbf16>
    %c0_39 = arith.constant 0 : index
    %c0_40 = arith.constant 0 : index
    %88 = vector.load %arg8[%c0_39, %c0_40] : memref<512x512xbf16, #tpu.memory_space<vmem>>, vector<512x512xbf16>
    %cst_41 = arith.constant dense<0.000000e+00> : vector<16x512xf32>
    %89 = tpu.matmul %87, %88, %cst_41 {dimension_numbers = #tpu.dot_dimension_numbers<[1], [0], [0], [1], [0, 0, 1, 1], [], []>} : vector<16x512xbf16>, vector<512x512xbf16>, vector<16x512xf32> -> vector<16x512xf32>
    %90 = vector.broadcast %14 : vector<16x1xf32> to vector<16x512xf32>
    %91 = arith.mulf %89, %90 : vector<16x512xf32>
    %cst_42 = arith.constant dense<0.000000e+00> : vector<512xf32>
    %92 = vector.multi_reduction <add>, %91, %cst_42 [0] : vector<16x512xf32> to vector<512xf32>
    %93 = vector.shape_cast %92 : vector<512xf32> to vector<1x512xf32>
    %94 = arith.mulf %91, %89 : vector<16x512xf32>
    %cst_43 = arith.constant dense<0.000000e+00> : vector<512xf32>
    %95 = vector.multi_reduction <add>, %94, %cst_43 [0] : vector<16x512xf32> to vector<512xf32>
    %96 = vector.shape_cast %95 : vector<512xf32> to vector<1x512xf32>
    %cst_44 = arith.constant 2.500000e-01 : f32
    %97 = vector.broadcast %cst_44 : f32 to vector<1x512xf32>
    %98 = arith.mulf %93, %97 : vector<1x512xf32>
    %cst_45 = arith.constant 2.500000e-01 : f32
    %99 = vector.broadcast %cst_45 : f32 to vector<1x512xf32>
    %100 = arith.mulf %96, %99 : vector<1x512xf32>
    %101 = arith.mulf %98, %98 : vector<1x512xf32>
    %102 = arith.subf %100, %101 : vector<1x512xf32>
    %cst_46 = arith.constant 0.000000e+00 : f32
    %103 = vector.broadcast %cst_46 : f32 to vector<1x512xf32>
    %104 = arith.maximumf %102, %103 : vector<1x512xf32>
    %c4 = arith.constant 4 : index
    %c0_47 = arith.constant 0 : index
    %105 = vector.load %arg2[%c4, %c0_47] : memref<8x512xf32, #tpu.memory_space<vmem>>, vector<1x512xf32>
    %c5 = arith.constant 5 : index
    %c0_48 = arith.constant 0 : index
    %106 = vector.load %arg2[%c5, %c0_48] : memref<8x512xf32, #tpu.memory_space<vmem>>, vector<1x512xf32>
    %cst_49 = arith.constant 9.99999974E-6 : f32
    %107 = vector.broadcast %cst_49 : f32 to vector<1x512xf32>
    %108 = arith.addf %104, %107 : vector<1x512xf32>
    %109 = math.rsqrt %108 : vector<1x512xf32>
    %110 = arith.mulf %105, %109 : vector<1x512xf32>
    %111 = arith.mulf %98, %110 : vector<1x512xf32>
    %112 = arith.subf %106, %111 : vector<1x512xf32>
    %113 = vector.broadcast %110 : vector<1x512xf32> to vector<16x512xf32>
    %114 = arith.mulf %89, %113 : vector<16x512xf32>
    %115 = vector.broadcast %112 : vector<1x512xf32> to vector<16x512xf32>
    %116 = arith.addf %114, %115 : vector<16x512xf32>
    %cst_50 = arith.constant 0.00999999977 : f32
    %117 = vector.broadcast %cst_50 : f32 to vector<16x512xf32>
    %118 = arith.mulf %117, %116 : vector<16x512xf32>
    %119 = arith.maximumf %116, %118 : vector<16x512xf32>
    %c2_i32_51 = arith.constant 2 : i32
    %120 = tpu.memref_slice %arg10[%c2_i32_51] : memref<3x!tpu.dma_semaphore, #tpu.memory_space<semaphore_mem>> -> memref<1x!tpu.dma_semaphore, #tpu.memory_space<semaphore_mem>>
    %121 = tpu.memref_squeeze %120 : memref<1x!tpu.dma_semaphore, #tpu.memory_space<semaphore_mem>> -> memref<!tpu.dma_semaphore, #tpu.memory_space<semaphore_mem>>
    tpu.wait_dma2 semaphore(%121 : memref<!tpu.dma_semaphore, #tpu.memory_space<semaphore_mem>>) src(%arg4 : memref<512x128xbf16, #tpu.memory_space<any>>) dst(%arg9 : memref<512x128xbf16, #tpu.memory_space<vmem>>)
    %122 = arith.truncf %119 : vector<16x512xf32> to vector<16x512xbf16>
    %c0_52 = arith.constant 0 : index
    %c0_53 = arith.constant 0 : index
    %123 = vector.load %arg9[%c0_52, %c0_53] : memref<512x128xbf16, #tpu.memory_space<vmem>>, vector<512x128xbf16>
    %cst_54 = arith.constant dense<0.000000e+00> : vector<16x128xf32>
    %124 = tpu.matmul %122, %123, %cst_54 {dimension_numbers = #tpu.dot_dimension_numbers<[1], [0], [0], [1], [0, 0, 1, 1], [], []>} : vector<16x512xbf16>, vector<512x128xbf16>, vector<16x128xf32> -> vector<16x128xf32>
    %c0_55 = arith.constant 0 : index
    %c0_56 = arith.constant 0 : index
    %125 = vector.load %arg5[%c0_55, %c0_56] : memref<1x128xf32, #tpu.memory_space<vmem>>, vector<1x128xf32>
    %126 = vector.broadcast %125 : vector<1x128xf32> to vector<16x128xf32>
    %127 = arith.addf %124, %126 : vector<16x128xf32>
    %c0_57 = arith.constant 0 : index
    %c0_58 = arith.constant 0 : index
    %128 = vector.load %arg6[%c0_57, %c0_58] : memref<16x128xf32, #tpu.memory_space<vmem>>, vector<16x128xf32>
    tpu.vector_store %arg6[%c0_57, %c0_58], %127 {strides = array<i32>} : memref<16x128xf32, #tpu.memory_space<vmem>>, vector<16x128xf32>,
    return
  }
}

</mosaic_0001>

<bundles_post_ra>
// kernel: tpu_custom_call.1
= control target key start
LH: loop header
LB: loop body
LE: loop exit
PB: predicated region body
PF: predicated region fallthrough
CT: control target
= control target key end

     0   :  { %11 = vsyncpa [#allocation7], 0  ;;  %s2759_s0 = inlined_call_operand.hbm [shape: bf16[16,128], index: 0, kind: input, shape index: {}]   ;;  %s2760_s1 = inlined_call_operand.hbm [shape: bf16[128,512], index: 1, kind: input, shape index: {}]   ;;  %s2761_s2 = inlined_call_operand.hbm [shape: f32[8,512], index: 2, kind: input, shape index: {}]   ;;  %s2762_s3 = inlined_call_operand.hbm [shape: bf16[2,512,512], index: 3, kind: input, shape index: {}]   ;;  %s2763_s4 = inlined_call_operand.hbm [shape: bf16[512,128], index: 4, kind: input, shape index: {}]   ;;  %s2764_s5 = inlined_call_operand.vmem [shape: f32[1,128], index: 5, kind: input, shape index: {}]   ;;  %s2765_s6 = inlined_call_operand.hbm [shape: f32[16,128], index: 6, kind: output, shape index: {}]  }
   0x1   :  { %12 = vsyncpa [#allocation10], 0 }
   0x2   :  { %13 = vsyncpa [#allocation8], 0  ;;  %s2256_s21 = smov [#allocation9]   ;;  %s2134_s25 = scalar_lea.hbm %s2760_s1, 4096 }
   0x3   :  { %s31_s22 = sshll.u32 %s2256_s21, 4  ;;  %p2135_p0 = scmp.ne.s32.totalorder %s2760_s1, %s2134_s25  ;;  %s32_s22 = int_to_ptr.vmem [resolvable:$true] %s31_s22 }
   0x4   :  { %p2138_p1 = scmp.lt.u32.totalorder %s2134_s25, %s2760_s1 }
   0x6   :  { %p2140_p2 = pnand %p2138_p1, %p2135_p0 }
   0x8   :  { %2143 = shalt.err (!%p2140_p2)
}
   0x9   :  { %s2144_s30 = scalar_lea.vmem %s32_s22, 4096  ;;  %p2149_p4 = scmp.lt.s32.totalorder %s32_s22, %s32_s22 }
   0xa   :  { %p2145_p3 = scmp.ne.s32.totalorder %s32_s22, %s2144_s30  ;;  %p2150_p5 = scmp.lt.s32.totalorder %s2144_s30, %s2144_s30 }
   0xc   :  { %p2151_p6 = por %p2150_p5, %p2149_p4 }
   0xe   :  { %p2152_p7 = pnand %p2151_p6, %p2145_p3 }
  0x10   :  { %2155 = shalt.err (!%p2152_p7)
}
  0x11   :  { %s2257_s7 = smov 256   ;;  %s2258_s8 = smov 16  }
  0x12   :  { %37 = dma.hbm_to_vmem [thread:$0]  %s2760_s1, 4096, %s32_s22, [#allocation10], %s2257_s7, %s2257_s7, %s2258_s8  }
  0x13   :  { %s2259_s11 = smov [#allocation6]   ;;  %s2156_s15 = scalar_lea.hbm %s2759_s0, 128 }
  0x14   :  { %s19_s12 = sshll.u32 %s2259_s11, 4  ;;  %p2157_p8 = scmp.ne.s32.totalorder %s2759_s0, %s2156_s15  ;;  %s20_s12 = int_to_ptr.vmem [resolvable:$true] %s19_s12 }
  0x15   :  { %p2160_p9 = scmp.lt.u32.totalorder %s2156_s15, %s2759_s0 }
  0x17   :  { %p2162_p10 = pnand %p2160_p9, %p2157_p8 }
  0x19   :  { %2165 = shalt.err (!%p2162_p10)
}
  0x1a   :  { %s2166_s20 = scalar_lea.vmem %s20_s12, 128  ;;  %p2171_p12 = scmp.lt.s32.totalorder %s20_s12, %s20_s12 }
  0x1b   :  { %p2167_p11 = scmp.ne.s32.totalorder %s20_s12, %s2166_s20  ;;  %p2172_p13 = scmp.lt.s32.totalorder %s2166_s20, %s2166_s20 }
  0x1d   :  { %p2173_p0 = por %p2172_p13, %p2171_p12 }
  0x1f   :  { %p2174_p1 = pnand %p2173_p0, %p2167_p11 }
  0x21   :  { %2177 = shalt.err (!%p2174_p1)
}
  0x22   :  { %s2260_s1 = smov 64   ;;  %s2261_s21 = smov 4  }
  0x23   :  { %25 = dma.hbm_to_vmem [thread:$0]  %s2759_s0, 128, %s20_s12, [#allocation7], %s2260_s1, %s2260_s1, %s2261_s21  }
  0x24   :  { %s2262_s24 = smov [#allocation11]   ;;  %s2178_s28 = scalar_lea.hbm %s2761_s2, 512 }
  0x25   :  { %s44_s25 = sshll.u32 %s2262_s24, 4  ;;  %p2179_p2 = scmp.ne.s32.totalorder %s2761_s2, %s2178_s28  ;;  %s45_s25 = int_to_ptr.vmem [resolvable:$true] %s44_s25 }
  0x26   :  { %p2182_p3 = scmp.lt.u32.totalorder %s2178_s28, %s2761_s2 }
  0x28   :  { %p2184_p4 = pnand %p2182_p3, %p2179_p2 }
  0x2a   :  { %2187 = shalt.err (!%p2184_p4)
}
  0x2b   :  { %s2188_s10 = scalar_lea.vmem %s45_s25, 512  ;;  %p2193_p6 = scmp.lt.s32.totalorder %s45_s25, %s45_s25 }
  0x2c   :  { %p2189_p5 = scmp.ne.s32.totalorder %s45_s25, %s2188_s10  ;;  %p2194_p7 = scmp.lt.s32.totalorder %s2188_s10, %s2188_s10 }
  0x2e   :  { %p2195_p8 = por %p2194_p7, %p2193_p6 }
  0x30   :  { %p2196_p9 = pnand %p2195_p8, %p2189_p5 }
  0x32   :  { %2199 = shalt.err (!%p2196_p9)
}
  0x33   :  { %47 = dma.hbm_to_vmem [thread:$0]  %s2761_s2, 512, %s45_s25, [#allocation10]  }
  0x34   :  { %2244 = dma.done.wait [#allocation7], 128  }
  0x35   :  { %2245 = vsyncadd [#allocation7], 4294967168 }
  0x36   :  { %2246 = dma.done.wait [#allocation10], 4608  }
  0x37   :  { %2247 = vsyncadd [#allocation10], 4294962688  ;;  %s64_s12 = sld [smem:[#allocation0]]   ;;  %80 = sst [smem:[#allocation14 + $0x2]] %s2261_s21  ;;  %v2263_v0 = vmov 0   ;;  %v143_v34 = vlaneseq  ;;  %v2273_v36 = vmov 0.0  }
  0x38   :  { %384 = vmatprep.mubr.bf16.mxu0 %v2263_v0  ;;  %427 = vmatprep.mubr.bf16.mxu1 %v2263_v0  ;;  %82 = sst [smem:[#allocation14 + $0x3]] %s2260_s1  ;;  %s2264_s13 = smov [#allocation2]  }
  0x39   :  { %s72_s14 = sshll.u32 %s2264_s13, 4  ;;  %88 = sst [smem:[#allocation14 + $0x6]] %s2257_s7  ;;  %v2372_v35 = vshrl.u32 %v143_v34, 7  ;;  %s73_s14 = int_to_ptr.vmem [resolvable:$true] %s72_s14 }
  0x3a   :  { %90 = sst [smem:[#allocation14 + $0x7]] %s2260_s1  ;;  %s2265_s2 = smov 512  }
  0x3b   :  { %92 = sst [smem:[#allocation14 + $0x8]] %s2261_s21  ;;  %s2266_s17 = smov 128   ;;  %vm146_vm0 = vcmp.lt.s32.totalorder %v2372_v35, 4 }
  0x3c   :  { %76 = sst [smem:[#allocation14]] %s2265_s2  ;;  %s2267_s18 = smov 2   ;;  %v2375_v37 = vsel %vm146_vm0, 1.0, %v2273_v36 }
  0x3d   :  { %s1937_s15 = sshll.u32 %s64_s12, 26  ;;  %78 = sst [smem:[#allocation14 + $0x1]] %s2265_s2 }
  0x3e   :  { %s1938_s16 = sadd.s32 134217728, %s1937_s15  ;;  %84 = sst [smem:[#allocation14 + $0x4]] %s2266_s17 }
  0x3f   :  { %86 = sst [smem:[#allocation14 + $0x5]] %s2267_s18  ;;  %s2268_s19 = smov [#allocation5]  }
  0x40   :  { %s2269_s20 = smov [#allocation13]   ;;  %s2270_s24 = smov [#allocation3]  }
  0x41   :  { %94 = dma.general %s2762_s3, 16384, %s73_s14, %s2268_s19, %s2269_s20, [#allocation14], %s1938_s16, 0  }
  0x42   :  { %112 = sst [smem:[#allocation16]] %s2265_s2  ;;  %s108_s25 = sshll.u32 %s2270_s24, 4  ;;  %s109_s25 = int_to_ptr.vmem [resolvable:$true] %s108_s25 }
  0x43   :  { %114 = sst [smem:[#allocation16 + $0x1]] %s2265_s2  ;;  %s95_s28 = scalar_lea.hbm %s2762_s3, 16384 }
  0x44   :  { %116 = sst [smem:[#allocation16 + $0x2]] %s2261_s21  ;;  %s2271_s29 = smov [#allocation5 + $0x1]  }
  0x45   :  { %118 = sst [smem:[#allocation16 + $0x3]] %s2260_s1  ;;  %s2272_s30 = smov [#allocation15]  }
  0x46   :  { %120 = sst [smem:[#allocation16 + $0x4]] %s2266_s17  ;;  %s2274_s3 = smov [#allocation4]  }
  0x47   :  { %122 = sst [smem:[#allocation16 + $0x5]] %s2267_s18  ;;  %s2200_s8 = scalar_lea.hbm %s2763_s4, 4096 }
  0x48   :  { %124 = sst [smem:[#allocation16 + $0x6]] %s2257_s7  ;;  %s139_s7 = sshll.u32 %s2274_s3, 4  ;;  %s140_s7 = int_to_ptr.vmem [resolvable:$true] %s139_s7 }
  0x49   :  { %126 = sst [smem:[#allocation16 + $0x7]] %s2260_s1  ;;  %p2201_p10 = scmp.ne.s32.totalorder %s2763_s4, %s2200_s8 }
  0x4a   :  { %128 = sst [smem:[#allocation16 + $0x8]] %s2261_s21  ;;  %p2204_p11 = scmp.lt.u32.totalorder %s2200_s8, %s2763_s4 }
  0x4b   :  { %130 = dma.general %s95_s28, 16384, %s109_s25, %s2271_s29, %s2272_s30, [#allocation16], %s1938_s16, 0  }
  0x4c   :  { %v2061_v1 = vld [vmem:[#allocation9 + $0x4] ss:$16 sps:$4 sm:$0xff]   ;;  %v2063_v2 = vld [vmem:[#allocation9 + $0xc] ss:$16 sps:$4 sm:$0xff]   ;;  %v2065_v3 = vld [vmem:[#allocation9] ss:$16 sps:$4 sm:$0xff]   ;;  %p2206_p12 = pnand %p2204_p11, %p2201_p10 }
  0x4d   :  { %352 = vmatprep.subr.bf16.mxu0 %v2061_v1  ;;  %v2066_v4 = vld [vmem:[#allocation9 + $0x8] ss:$16 sps:$4 sm:$0xff]   ;;  %395 = vmatprep.subr.bf16.mxu1 %v2063_v2  ;;  %v2067_v5 = vld [vmem:[#allocation9 + $0x24] ss:$16 sps:$4 sm:$0xff]   ;;  %v2069_v6 = vld [vmem:[#allocation9 + $0x2c] ss:$16 sps:$4 sm:$0xff]  }
  0x4e   :  { %353 = vmatpush1.bf16.msra.mxu0 %v2065_v3  ;;  %396 = vmatpush1.bf16.msra.mxu1 %v2066_v4  ;;  %v2071_v7 = vld [vmem:[#allocation9 + $0x20] ss:$16 sps:$4 sm:$0xff]   ;;  %v2072_v8 = vld [vmem:[#allocation9 + $0x28] ss:$16 sps:$4 sm:$0xff]   ;;  %v2073_v9 = vld [vmem:[#allocation9 + $0x44] ss:$16 sps:$4 sm:$0xff]  }
  0x4f   :  { %354 = vmatprep.subr.bf16.mxu0 %v2067_v5  ;;  %397 = vmatprep.subr.bf16.mxu1 %v2069_v6  ;;  %v2075_v10 = vld [vmem:[#allocation9 + $0x4c] ss:$16 sps:$4 sm:$0xff]   ;;  %v2077_v11 = vld [vmem:[#allocation9 + $0x40] ss:$16 sps:$4 sm:$0xff]   ;;  %v2078_v12 = vld [vmem:[#allocation9 + $0x48] ss:$16 sps:$4 sm:$0xff]  }
  0x50   :  { %v2079_v13 = vld [vmem:[#allocation9 + $0x64] ss:$16 sps:$4 sm:$0xff]   ;;  %v2081_v14 = vld [vmem:[#allocation9 + $0x6c] ss:$16 sps:$4 sm:$0xff]   ;;  %v2083_v15 = vld [vmem:[#allocation9 + $0x60] ss:$16 sps:$4 sm:$0xff]  }
  0x51   :  { %v2084_v16 = vld [vmem:[#allocation9 + $0x68] ss:$16 sps:$4 sm:$0xff]   ;;  %v2085_v17 = vld [vmem:[#allocation9 + $0x84] ss:$16 sps:$4 sm:$0xff]   ;;  %v2087_v18 = vld [vmem:[#allocation9 + $0x8c] ss:$16 sps:$4 sm:$0xff]  }
  0x52   :  { %355 = vmatpush1.bf16.msra.mxu0 %v2071_v7  ;;  %398 = vmatpush1.bf16.msra.mxu1 %v2072_v8  ;;  %v2089_v19 = vld [vmem:[#allocation9 + $0x80] ss:$16 sps:$4 sm:$0xff]   ;;  %v2090_v20 = vld [vmem:[#allocation9 + $0x88] ss:$16 sps:$4 sm:$0xff]   ;;  %v2091_v21 = vld [vmem:[#allocation9 + $0xa4] ss:$16 sps:$4 sm:$0xff]  }
  0x53   :  { %356 = vmatprep.subr.bf16.mxu0 %v2073_v9  ;;  %399 = vmatprep.subr.bf16.mxu1 %v2075_v10  ;;  %v2093_v22 = vld [vmem:[#allocation9 + $0xac] ss:$16 sps:$4 sm:$0xff]   ;;  %v2095_v23 = vld [vmem:[#allocation9 + $0xa0] ss:$16 sps:$4 sm:$0xff]   ;;  %v2096_v24 = vld [vmem:[#allocation9 + $0xa8] ss:$16 sps:$4 sm:$0xff]  }
  0x54   :  { %v2097_v25 = vld [vmem:[#allocation9 + $0xc4] ss:$16 sps:$4 sm:$0xff]   ;;  %v2099_v26 = vld [vmem:[#allocation9 + $0xcc] ss:$16 sps:$4 sm:$0xff]   ;;  %v2101_v27 = vld [vmem:[#allocation9 + $0xc0] ss:$16 sps:$4 sm:$0xff]  }
  0x55   :  { %v2102_v28 = vld [vmem:[#allocation9 + $0xc8] ss:$16 sps:$4 sm:$0xff]   ;;  %v2103_v29 = vld [vmem:[#allocation9 + $0xe4] ss:$16 sps:$4 sm:$0xff]   ;;  %v2105_v30 = vld [vmem:[#allocation9 + $0xec] ss:$16 sps:$4 sm:$0xff]  }
  0x56   :  { %357 = vmatpush1.bf16.msra.mxu0 %v2077_v11  ;;  %400 = vmatpush1.bf16.msra.mxu1 %v2078_v12  ;;  %v2107_v31 = vld [vmem:[#allocation9 + $0xe0] ss:$16 sps:$4 sm:$0xff]   ;;  %v2108_v32 = vld [vmem:[#allocation9 + $0xe8] ss:$16 sps:$4 sm:$0xff]  }
  0x57   :  { %358 = vmatprep.subr.bf16.mxu0 %v2079_v13  ;;  %401 = vmatprep.subr.bf16.mxu1 %v2081_v14  ;;  %v2109_v33 = vld [vmem:[#allocation6] sm:$0xff]  }
  0x5a   :  { %359 = vmatpush1.bf16.msra.mxu0 %v2083_v15  ;;  %402 = vmatpush1.bf16.msra.mxu1 %v2084_v16 }
  0x5b   :  { %360 = vmatprep.subr.bf16.mxu0 %v2085_v17  ;;  %403 = vmatprep.subr.bf16.mxu1 %v2087_v18 }
  0x5e   :  { %361 = vmatpush1.bf16.msra.mxu0 %v2089_v19  ;;  %404 = vmatpush1.bf16.msra.mxu1 %v2090_v20 }
  0x5f   :  { %362 = vmatprep.subr.bf16.mxu0 %v2091_v21  ;;  %405 = vmatprep.subr.bf16.mxu1 %v2093_v22 }
  0x62   :  { %363 = vmatpush1.bf16.msra.mxu0 %v2095_v23  ;;  %406 = vmatpush1.bf16.msra.mxu1 %v2096_v24 }
  0x63   :  { %364 = vmatprep.subr.bf16.mxu0 %v2097_v25  ;;  %407 = vmatprep.subr.bf16.mxu1 %v2099_v26 }
  0x66   :  { %365 = vmatpush1.bf16.msra.mxu0 %v2101_v27  ;;  %408 = vmatpush1.bf16.msra.mxu1 %v2102_v28 }
  0x67   :  { %366 = vmatprep.subr.bf16.mxu0 %v2103_v29  ;;  %409 = vmatprep.subr.bf16.mxu1 %v2105_v30 }
  0x6a   :  { %367 = vmatpush1.bf16.msra.mxu0 %v2107_v31  ;;  %410 = vmatpush1.bf16.msra.mxu1 %v2108_v32 }
  0x6d   :  { %385 = vmatmul.mubr.bf16.vlgmr.msra.gmra.mrb[0].mxu0 %v2109_v33  ;;  %428 = vmatmul.mubr.bf16.vlgmr.msra.gmra.mrb[0].mxu1 %v2109_v33 }
  0x6e   :  { %2209 = shalt.err (!%p2206_p12)  }
  0x6f   :  { %s2210_s12 = scalar_lea.vmem %s140_s7, 4096  ;;  %p2215_p0 = scmp.lt.s32.totalorder %s140_s7, %s140_s7 }
  0x70   :  { %p2211_p13 = scmp.ne.s32.totalorder %s140_s7, %s2210_s12  ;;  %p2216_p1 = scmp.lt.s32.totalorder %s2210_s12, %s2210_s12 }
  0x72   :  { %p2217_p2 = por %p2216_p1, %p2215_p0 }
  0x74   :  { %p2218_p3 = pnand %p2217_p2, %p2211_p13 }
  0x76   :  { %2221 = shalt.err (!%p2218_p3)  }
  0x77   :  { %142 = dma.hbm_to_vmem [thread:$0]  %s2763_s4, 4096, %s140_s7, [#allocation5 + $0x2] }
 0x140   :  { %v2389_v38 = vpop.f32.mrb[0].mxu0  ;;  %v2391_v39 = vpop.f32.mrb[0].mxu1 }
 0x141   :  { %v2393_v40 = vpop.f32.mrb[1].mxu0  ;;  %v2395_v41 = vpop.f32.mrb[1].mxu1  ;;  %v466_v42 = vmul.f32 %v2389_v38, %v2389_v38  ;;  %v468_v43 = vmul.f32 %v2391_v39, %v2391_v39 }
 0x142   :  { %v467_v44 = vmul.f32 %v2393_v40, %v2393_v40  ;;  %v469_v45 = vmul.f32 %v2395_v41, %v2395_v41  ;;  %v2405_v46 = vpop.f32.mrb[2].mxu0  ;;  %v2407_v47 = vpop.f32.mrb[2].mxu1 }
 0x143   :  { %v438_v48 = vadd.f32 %v2405_v46, %v2389_v38  ;;  %v470_v49 = vmul.f32 %v2405_v46, %v2405_v46  ;;  %v452_v50 = vadd.f32 %v2407_v47, %v2391_v39  ;;  %v472_v51 = vmul.f32 %v2407_v47, %v2407_v47  ;;  %v2417_v52 = vpop.f32.mrb[3].mxu0  ;;  %v2419_v53 = vpop.f32.mrb[3].mxu1 }
 0x144   :  { %v445_v54 = vadd.f32 %v2417_v52, %v2393_v40  ;;  %v471_v55 = vmul.f32 %v2417_v52, %v2417_v52  ;;  %v459_v56 = vadd.f32 %v2419_v53, %v2395_v41  ;;  %v473_v57 = vmul.f32 %v2419_v53, %v2419_v53 }
 0x145   :  { %v439_v58 = vrot.slane %v438_v48, 4  ;;  %v474_v59 = vadd.f32 %v470_v49, %v466_v42  ;;  %v453_v60 = vrot.slane %v452_v50, 4  ;;  %v488_v61 = vadd.f32 %v472_v51, %v468_v43 }
 0x146   :  { %v446_v62 = vrot.slane %v445_v54, 4  ;;  %v481_v63 = vadd.f32 %v471_v55, %v467_v44  ;;  %v460_v0 = vrot.slane %v459_v56, 4  ;;  %v495_v1 = vadd.f32 %v473_v57, %v469_v45 }
 0x147   :  { %v440_v2 = vadd.f32 %v439_v58, %v438_v48  ;;  %v475_v3 = vrot.slane %v474_v59, 4  ;;  %v454_v4 = vadd.f32 %v453_v60, %v452_v50  ;;  %v489_v5 = vrot.slane %v488_v61, 4 }
 0x148   :  { %v447_v6 = vadd.f32 %v446_v62, %v445_v54  ;;  %v482_v7 = vrot.slane %v481_v63, 4  ;;  %v461_v8 = vadd.f32 %v460_v0, %v459_v56  ;;  %v496_v9 = vrot.slane %v495_v1, 4 }
 0x149   :  { %v441_v10 = vrot.slane %v440_v2, 2  ;;  %v476_v11 = vadd.f32 %v475_v3, %v474_v59  ;;  %v455_v12 = vrot.slane %v454_v4, 2  ;;  %v490_v13 = vadd.f32 %v489_v5, %v488_v61 }
 0x14a   :  { %v448_v14 = vrot.slane %v447_v6, 2  ;;  %v483_v15 = vadd.f32 %v482_v7, %v481_v63  ;;  %v462_v16 = vrot.slane %v461_v8, 2  ;;  %v497_v17 = vadd.f32 %v496_v9, %v495_v1 }
 0x14b   :  { %v442_v18 = vadd.f32 %v441_v10, %v440_v2  ;;  %v477_v19 = vrot.slane %v476_v11, 2  ;;  %v456_v20 = vadd.f32 %v455_v12, %v454_v4  ;;  %v491_v21 = vrot.slane %v490_v13, 2 }
 0x14c   :  { %v449_v22 = vadd.f32 %v448_v14, %v447_v6  ;;  %v484_v23 = vrot.slane %v483_v15, 2  ;;  %v463_v24 = vadd.f32 %v462_v16, %v461_v8  ;;  %v498_v25 = vrot.slane %v497_v17, 2 }
 0x14d   :  { %v443_v26 = vrot.slane %v442_v18, 1  ;;  %v478_v27 = vadd.f32 %v477_v19, %v476_v11  ;;  %v457_v28 = vrot.slane %v456_v20, 1  ;;  %v492_v29 = vadd.f32 %v491_v21, %v490_v13 }
 0x14e   :  { %v450_v30 = vrot.slane %v449_v22, 1  ;;  %v485_v31 = vadd.f32 %v484_v23, %v483_v15  ;;  %v464_v32 = vrot.slane %v463_v24, 1  ;;  %v499_v33 = vadd.f32 %v498_v25, %v497_v17 }
 0x14f   :  { %v444_v34 = vadd.f32 %v443_v26, %v442_v18  ;;  %v479_v36 = vrot.slane %v478_v27, 1  ;;  %v458_v42 = vadd.f32 %v457_v28, %v456_v20  ;;  %v493_v43 = vrot.slane %v492_v29, 1 }
 0x150   :  { %v451_v44 = vadd.f32 %v450_v30, %v449_v22  ;;  %v486_v45 = vrot.slane %v485_v31, 1  ;;  %v465_v48 = vadd.f32 %v464_v32, %v463_v24  ;;  %v500_v49 = vrot.slane %v499_v33, 1 }
 0x151   :  { %v480_v50 = vadd.f32 %v479_v36, %v478_v27  ;;  %v502_v51 = vmul.f32 0.25, %v444_v34  ;;  %v494_v54 = vadd.f32 %v493_v43, %v492_v29  ;;  %v504_v55 = vmul.f32 0.25, %v458_v42  ;;  %v522_v29 = vld [vmem:[#allocation11] ss:$8 sm:$0xf] }
 0x152   :  { %v487_v56 = vadd.f32 %v486_v45, %v485_v31  ;;  %v503_v57 = vmul.f32 0.25, %v451_v44  ;;  %v501_v58 = vadd.f32 %v500_v49, %v499_v33  ;;  %v505_v59 = vmul.f32 0.25, %v465_v48 }
 0x153   :  { %v506_v60 = vmul.f32 0.25, %v480_v50  ;;  %v510_v61 = vmul.f32 %v502_v51, %v502_v51  ;;  %v508_v62 = vmul.f32 0.25, %v494_v54  ;;  %v512_v63 = vmul.f32 %v504_v55, %v504_v55 }
 0x154   :  { %v507_v0 = vmul.f32 0.25, %v487_v56  ;;  %v511_v1 = vmul.f32 %v503_v57, %v503_v57  ;;  %v509_v2 = vmul.f32 0.25, %v501_v58  ;;  %v513_v3 = vmul.f32 %v505_v59, %v505_v59 }
 0x155   :  { %v514_v4 = vsub.f32 %v506_v60, %v510_v61  ;;  %v516_v5 = vsub.f32 %v508_v62, %v512_v63  ;;  %v2275_v16 = vmov 1966171168   ;;  %v2435_v30 = vsub.s32 0, %v2372_v35 }
 0x156   :  { %v515_v6 = vsub.f32 %v507_v0, %v511_v1  ;;  %v517_v7 = vsub.f32 %v509_v2, %v513_v3  ;;  %v540_v17 = vunpack.c.l.s4 %v2275_v16  ;;  %v2439_v32 = vsub.s32 1, %v2372_v35 }
 0x157   :  { %v518_v8 = vmax.f32 %v514_v4, 0.0  ;;  %v520_v9 = vmax.f32 %v516_v5, 0.0  ;;  %v2442_v33 = vsub.s32 2, %v2372_v35  ;;  %v2445_v34 = vsub.s32 3, %v2372_v35 }
 0x158   :  { %v519_v10 = vmax.f32 %v515_v6, 0.0  ;;  %v521_v11 = vmax.f32 %v517_v7, 0.0  ;;  %v541_v18 = vunpack.c.0.s8 %v540_v17 }
 0x159   :  { %v525_v12 = vadd.f32 1e-05, %v518_v8  ;;  %v527_v13 = vadd.f32 1e-05, %v520_v9 }
 0x15a   :  { %v526_v14 = vadd.f32 1e-05, %v519_v10  ;;  %v528_v15 = vadd.f32 1e-05, %v521_v11  ;;  %v2430_v21 = vsub.s32 %v541_v18, %v2372_v35 }
 0x15b   :  { %2110 = vrsqrt.f32 %v525_v12 }
 0x15c   :  { %2112 = vrsqrt.f32 %v527_v13 }
 0x15d   :  { %2114 = vrsqrt.f32 %v526_v14 }
 0x15e   :  { %2116 = vrsqrt.f32 %v528_v15 }
 0x165   :  { %v2111_v19 = vpop.eup %2110 }
 0x166   :  { %v2113_v20 = vpop.eup %2112 }
 0x167   :  { %v2115_v22 = vpop.eup %2114 }
 0x168   :  { %v2117_v23 = vpop.eup %2116  ;;  %v537_v24 = vcombine.low %v2111_v19, %v2115_v22 }
 0x169   :  { %v538_v25 = vcombine.low %v2113_v20, %v2117_v23 }
 0x16a   :  { %v545_v26 = vrot.slane %v537_v24, %v2430_v21 }
 0x16b   :  { %v552_v27 = vrot.slane %v538_v25, %v2430_v21 }
 0x16d   :  { %v553_v28 = vcombine.low %v545_v26, %v552_v27 }
 0x16f   :  { %v560_v31 = vrot.slane %v553_v28, %v2430_v21 }
 0x171   :  { %v562_v36 = vmul.f32 %v560_v31, %v522_v29 }
 0x173   :  { %v567_v42 = vrot.slane %v562_v36, %v2435_v30  ;;  %v571_v43 = vrot.slane %v562_v36, %v2439_v32  ;;  %v575_v44 = vrot.slane %v562_v36, %v2442_v33  ;;  %v579_v45 = vrot.slane %v562_v36, %v2445_v34 }
 0x175   :  { %v584_v48 = vmul.f32 %v567_v42, %v502_v51  ;;  %v585_v49 = vmul.f32 %v571_v43, %v503_v57  ;;  %v586_v50 = vmul.f32 %v575_v44, %v504_v55  ;;  %v587_v54 = vmul.f32 %v579_v45, %v505_v59 }
 0x176   :  { %v618_v56 = vmul.f32 %v567_v42, %v2389_v38  ;;  %v619_v58 = vmul.f32 %v571_v43, %v2393_v40  ;;  %v620_v35 = vmul.f32 %v575_v44, %v2391_v39  ;;  %v621_v60 = vmul.f32 %v579_v45, %v2395_v41  ;;  %v524_v40 = vld [vmem:[#allocation11 + $0x1] ss:$8 sm:$0xf] }
 0x177   :  { %v592_v61 = vcombine.low %v584_v48, %v585_v49  ;;  %v593_v62 = vcombine.low %v586_v50, %v587_v54  ;;  %v622_v63 = vmul.f32 %v567_v42, %v2405_v46  ;;  %v623_v0 = vmul.f32 %v571_v43, %v2417_v52 }
 0x178   :  { %v624_v1 = vmul.f32 %v575_v44, %v2407_v47  ;;  %v625_v51 = vmul.f32 %v579_v45, %v2419_v53 }
 0x179   :  { %v600_v55 = vrot.slane %v592_v61, %v2430_v21  ;;  %v607_v38 = vrot.slane %v593_v62, %v2430_v21 }
 0x17b   :  { %v608_v57 = vcombine.low %v600_v55, %v607_v38 }
 0x17d   :  { %v615_v39 = vrot.slane %v608_v57, %v2430_v21 }
 0x17f   :  { %v617_v59 = vsub.f32 %v524_v40, %v615_v39 }
 0x181   :  { %v630_v41 = vrot.slane %v617_v59, %v2435_v30  ;;  %v634_v2 = vrot.slane %v617_v59, %v2439_v32  ;;  %v638_v46 = vrot.slane %v617_v59, %v2442_v33  ;;  %v642_v52 = vrot.slane %v617_v59, %v2445_v34 }
 0x183   :  { %v2466_v47 = vadd.f32 %v630_v41, %v618_v56  ;;  %v648_v53 = vadd.f32 %v634_v2, %v619_v58  ;;  %v2468_v3 = vadd.f32 %v638_v46, %v620_v35  ;;  %v2470_v4 = vadd.f32 %v642_v52, %v621_v60 }
 0x184   :  { %v2472_v5 = vadd.f32 %v630_v41, %v622_v63  ;;  %v652_v6 = vadd.f32 %v634_v2, %v623_v0  ;;  %v2474_v7 = vadd.f32 %v638_v46, %v624_v1  ;;  %v2476_v8 = vadd.f32 %v642_v52, %v625_v51 }
 0x185   :  { %v2479_v9 = vmul.f32 0.01, %v2466_v47  ;;  %v656_v10 = vmul.f32 0.01, %v648_v53  ;;  %v2482_v11 = vmul.f32 0.01, %v2468_v3 }
 0x186   :  { %v2485_v12 = vmul.f32 0.01, %v2470_v4  ;;  %v2488_v13 = vmul.f32 0.01, %v2472_v5  ;;  %v660_v14 = vmul.f32 0.01, %v652_v6 }
 0x187   :  { %v2491_v15 = vmul.f32 0.01, %v2474_v7  ;;  %v2494_v16 = vmul.f32 0.01, %v2476_v8  ;;  %v663_v17 = vmax.f32 %v2466_v47, %v2479_v9  ;;  %v664_v18 = vmax.f32 %v648_v53, %v656_v10 }
 0x188   :  { %v665_v19 = vmax.f32 %v2468_v3, %v2482_v11  ;;  %v666_v20 = vmax.f32 %v2470_v4, %v2485_v12  ;;  %v667_v22 = vmax.f32 %v2472_v5, %v2488_v13  ;;  %v668_v23 = vmax.f32 %v652_v6, %v660_v14 }
 0x189   :  { %v669_v24 = vmax.f32 %v2474_v7, %v2491_v15  ;;  %v670_v25 = vmax.f32 %v2476_v8, %v2494_v16 }
 0x18a   :  { %2248 = dma.done.wait [#allocation5], 16384 }
 0x18b   :  { %2249 = vsyncadd [#allocation5], 4294950912  ;;  %v676_v26 = vpack.c.bf16 %v668_v23, %v664_v18  ;;  %v680_v27 = vld [vmem:[#allocation2 + $0x8] sm:$0xff]  ;;  %v682_v28 = vld [vmem:[#allocation2 + $0x18] sm:$0xff] }
 0x18c   :  { %v679_v29 = vld [vmem:[#allocation2] sm:$0xff]  ;;  %807 = vmatprep.subr.bf16.mxu0 %v680_v27  ;;  %893 = vmatprep.subr.bf16.mxu1 %v682_v28  ;;  %v681_v31 = vld [vmem:[#allocation2 + $0x10] sm:$0xff]  ;;  %v684_v36 = vld [vmem:[#allocation2 + $0x28] sm:$0xff] }
 0x18d   :  { %839 = vmatprep.mubr.bf16.mxu0 %v676_v26  ;;  %925 = vmatprep.mubr.bf16.mxu1 %v676_v26  ;;  %v686_v42 = vld [vmem:[#allocation2 + $0x38] sm:$0xff]  ;;  %v683_v43 = vld [vmem:[#allocation2 + $0x20] sm:$0xff]  ;;  %v685_v44 = vld [vmem:[#allocation2 + $0x30] sm:$0xff] }
 0x18e   :  { %808 = vmatpush1.bf16.msra.mxu0 %v679_v29  ;;  %894 = vmatpush1.bf16.msra.mxu1 %v681_v31  ;;  %v688_v45 = vld [vmem:[#allocation2 + $0x48] sm:$0xff]  ;;  %v690_v48 = vld [vmem:[#allocation2 + $0x58] sm:$0xff]  ;;  %v687_v49 = vld [vmem:[#allocation2 + $0x40] sm:$0xff] }
 0x18f   :  { %809 = vmatprep.subr.bf16.mxu0 %v684_v36  ;;  %895 = vmatprep.subr.bf16.mxu1 %v686_v42  ;;  %v689_v50 = vld [vmem:[#allocation2 + $0x50] sm:$0xff]  ;;  %v692_v54 = vld [vmem:[#allocation2 + $0x68] sm:$0xff]  ;;  %v694_v56 = vld [vmem:[#allocation2 + $0x78] sm:$0xff] }
 0x190   :  { %v691_v58 = vld [vmem:[#allocation2 + $0x60] sm:$0xff]  ;;  %v693_v35 = vld [vmem:[#allocation2 + $0x70] sm:$0xff]  ;;  %v696_v60 = vld [vmem:[#allocation2 + $0x88] sm:$0xff] }
 0x191   :  { %v698_v61 = vld [vmem:[#allocation2 + $0x98] sm:$0xff]  ;;  %v695_v62 = vld [vmem:[#allocation2 + $0x80] sm:$0xff]  ;;  %v697_v63 = vld [vmem:[#allocation2 + $0x90] sm:$0xff] }
 0x192   :  { %810 = vmatpush1.bf16.msra.mxu0 %v683_v43  ;;  %896 = vmatpush1.bf16.msra.mxu1 %v685_v44  ;;  %v700_v0 = vld [vmem:[#allocation2 + $0xa8] sm:$0xff]  ;;  %v702_v1 = vld [vmem:[#allocation2 + $0xb8] sm:$0xff]  ;;  %v699_v51 = vld [vmem:[#allocation2 + $0xa0] sm:$0xff] }
 0x193   :  { %811 = vmatprep.subr.bf16.mxu0 %v688_v45  ;;  %897 = vmatprep.subr.bf16.mxu1 %v690_v48  ;;  %v701_v55 = vld [vmem:[#allocation2 + $0xb0] sm:$0xff]  ;;  %v704_v38 = vld [vmem:[#allocation2 + $0xc8] sm:$0xff]  ;;  %v706_v57 = vld [vmem:[#allocation2 + $0xd8] sm:$0xff] }
 0x194   :  { %v703_v40 = vld [vmem:[#allocation2 + $0xc0] sm:$0xff]  ;;  %v705_v39 = vld [vmem:[#allocation2 + $0xd0] sm:$0xff]  ;;  %v708_v59 = vld [vmem:[#allocation2 + $0xe8] sm:$0xff] }
 0x195   :  { %v710_v41 = vld [vmem:[#allocation2 + $0xf8] sm:$0xff]  ;;  %v707_v2 = vld [vmem:[#allocation2 + $0xe0] sm:$0xff]  ;;  %v709_v46 = vld [vmem:[#allocation2 + $0xf0] sm:$0xff] }
 0x196   :  { %812 = vmatpush1.bf16.msra.mxu0 %v687_v49  ;;  %898 = vmatpush1.bf16.msra.mxu1 %v689_v50  ;;  %v712_v52 = vld [vmem:[#allocation2 + $0x108] sm:$0xff]  ;;  %v714_v53 = vld [vmem:[#allocation2 + $0x118] sm:$0xff]  ;;  %v711_v6 = vld [vmem:[#allocation2 + $0x100] sm:$0xff] }
 0x197   :  { %813 = vmatprep.subr.bf16.mxu0 %v692_v54  ;;  %899 = vmatprep.subr.bf16.mxu1 %v694_v56  ;;  %v713_v10 = vld [vmem:[#allocation2 + $0x110] sm:$0xff]  ;;  %v716_v14 = vld [vmem:[#allocation2 + $0x128] sm:$0xff]  ;;  %v718_v18 = vld [vmem:[#allocation2 + $0x138] sm:$0xff] }
 0x198   :  { %v715_v23 = vld [vmem:[#allocation2 + $0x120] sm:$0xff]  ;;  %v717_v26 = vld [vmem:[#allocation2 + $0x130] sm:$0xff]  ;;  %v720_v27 = vld [vmem:[#allocation2 + $0x148] sm:$0xff] }
 0x199   :  { %v722_v28 = vld [vmem:[#allocation2 + $0x158] sm:$0xff]  ;;  %v719_v29 = vld [vmem:[#allocation2 + $0x140] sm:$0xff]  ;;  %v721_v31 = vld [vmem:[#allocation2 + $0x150] sm:$0xff] }
 0x19a   :  { %814 = vmatpush1.bf16.msra.mxu0 %v691_v58  ;;  %900 = vmatpush1.bf16.msra.mxu1 %v693_v35  ;;  %v724_v36 = vld [vmem:[#allocation2 + $0x168] sm:$0xff]  ;;  %v726_v42 = vld [vmem:[#allocation2 + $0x178] sm:$0xff]  ;;  %v723_v43 = vld [vmem:[#allocation2 + $0x160] sm:$0xff] }
 0x19b   :  { %815 = vmatprep.subr.bf16.mxu0 %v696_v60  ;;  %901 = vmatprep.subr.bf16.mxu1 %v698_v61  ;;  %v725_v44 = vld [vmem:[#allocation2 + $0x170] sm:$0xff]  ;;  %v728_v45 = vld [vmem:[#allocation2 + $0x188] sm:$0xff]  ;;  %v730_v48 = vld [vmem:[#allocation2 + $0x198] sm:$0xff] }
 0x19c   :  { %v727_v49 = vld [vmem:[#allocation2 + $0x180] sm:$0xff]  ;;  %v729_v50 = vld [vmem:[#allocation2 + $0x190] sm:$0xff]  ;;  %v732_v54 = vld [vmem:[#allocation2 + $0x1a8] sm:$0xff] }
 0x19d   :  { %v734_v56 = vld [vmem:[#allocation2 + $0x1b8] sm:$0xff]  ;;  %v731_v58 = vld [vmem:[#allocation2 + $0x1a0] sm:$0xff]  ;;  %v733_v35 = vld [vmem:[#allocation2 + $0x1b0] sm:$0xff] }
 0x19e   :  { %816 = vmatpush1.bf16.msra.mxu0 %v695_v62  ;;  %902 = vmatpush1.bf16.msra.mxu1 %v697_v63  ;;  %v736_v60 = vld [vmem:[#allocation2 + $0x1c8] sm:$0xff]  ;;  %v738_v61 = vld [vmem:[#allocation2 + $0x1d8] sm:$0xff]  ;;  %v735_v62 = vld [vmem:[#allocation2 + $0x1c0] sm:$0xff] }
 0x19f   :  { %817 = vmatprep.subr.bf16.mxu0 %v700_v0  ;;  %903 = vmatprep.subr.bf16.mxu1 %v702_v1  ;;  %v737_v63 = vld [vmem:[#allocation2 + $0x1d0] sm:$0xff]  ;;  %v740_v0 = vld [vmem:[#allocation2 + $0x1e8] sm:$0xff]  ;;  %v742_v1 = vld [vmem:[#allocation2 + $0x1f8] sm:$0xff] }
 0x1a0   :  { %v747_v47 = vld [vmem:[#allocation2 + $0x220] sm:$0xff]  ;;  %v749_v5 = vld [vmem:[#allocation2 + $0x230] sm:$0xff]  ;;  %v752_v9 = vld [vmem:[#allocation2 + $0x248] sm:$0xff] }
 0x1a1   :  { %v754_v13 = vld [vmem:[#allocation2 + $0x258] sm:$0xff]  ;;  %v751_v4 = vld [vmem:[#allocation2 + $0x240] sm:$0xff]  ;;  %v753_v12 = vld [vmem:[#allocation2 + $0x250] sm:$0xff] }
 0x1a2   :  { %818 = vmatpush1.bf16.msra.mxu0 %v699_v51  ;;  %904 = vmatpush1.bf16.msra.mxu1 %v701_v55  ;;  %v739_v51 = vld [vmem:[#allocation2 + $0x1e0] sm:$0xff]  ;;  %v741_v55 = vld [vmem:[#allocation2 + $0x1f0] sm:$0xff]  ;;  %v756_v8 = vld [vmem:[#allocation2 + $0x268] sm:$0xff] }
 0x1a3   :  { %819 = vmatprep.subr.bf16.mxu0 %v704_v38  ;;  %905 = vmatprep.subr.bf16.mxu1 %v706_v57  ;;  %v744_v38 = vld [vmem:[#allocation2 + $0x208] sm:$0xff]  ;;  %v746_v57 = vld [vmem:[#allocation2 + $0x218] sm:$0xff] }
 0x1a4   :  { %v758_v16 = vld [vmem:[#allocation2 + $0x278] sm:$0xff] }
 0x1a6   :  { %820 = vmatpush1.bf16.msra.mxu0 %v703_v40  ;;  %906 = vmatpush1.bf16.msra.mxu1 %v705_v39  ;;  %v675_v40 = vpack.c.bf16 %v667_v22, %v663_v17  ;;  %v743_v39 = vld [vmem:[#allocation2 + $0x200] sm:$0xff]  ;;  %v760_v22 = vld [vmem:[#allocation2 + $0x288] sm:$0xff] }
 0x1a7   :  { %821 = vmatprep.subr.bf16.mxu0 %v708_v59  ;;  %907 = vmatprep.subr.bf16.mxu1 %v710_v41  ;;  %v745_v59 = vld [vmem:[#allocation2 + $0x210] sm:$0xff]  ;;  %v748_v41 = vld [vmem:[#allocation2 + $0x228] sm:$0xff]  ;;  %v755_v17 = vld [vmem:[#allocation2 + $0x260] sm:$0xff] }
 0x1aa   :  { %822 = vmatpush1.bf16.msra.mxu0 %v707_v2  ;;  %908 = vmatpush1.bf16.msra.mxu1 %v709_v46  ;;  %v750_v2 = vld [vmem:[#allocation2 + $0x238] sm:$0xff]  ;;  %v678_v46 = vpack.c.bf16 %v670_v25, %v666_v20  ;;  %v757_v20 = vld [vmem:[#allocation2 + $0x270] sm:$0xff] }
 0x1ab   :  { %823 = vmatprep.subr.bf16.mxu0 %v712_v52  ;;  %909 = vmatprep.subr.bf16.mxu1 %v714_v53  ;;  %v762_v25 = vld [vmem:[#allocation2 + $0x298] sm:$0xff]  ;;  %v759_v52 = vld [vmem:[#allocation2 + $0x280] sm:$0xff]  ;;  %v761_v53 = vld [vmem:[#allocation2 + $0x290] sm:$0xff] }
 0x1ae   :  { %824 = vmatpush1.bf16.msra.mxu0 %v711_v6  ;;  %910 = vmatpush1.bf16.msra.mxu1 %v713_v10  ;;  %v764_v6 = vld [vmem:[#allocation2 + $0x2a8] sm:$0xff]  ;;  %v766_v10 = vld [vmem:[#allocation2 + $0x2b8] sm:$0xff] }
 0x1af   :  { %825 = vmatprep.subr.bf16.mxu0 %v716_v14  ;;  %911 = vmatprep.subr.bf16.mxu1 %v718_v18  ;;  %v763_v14 = vld [vmem:[#allocation2 + $0x2a0] sm:$0xff]  ;;  %v765_v18 = vld [vmem:[#allocation2 + $0x2b0] sm:$0xff] }
 0x1b2   :  { %826 = vmatpush1.bf16.msra.mxu0 %v715_v23  ;;  %912 = vmatpush1.bf16.msra.mxu1 %v717_v26  ;;  %v768_v23 = vld [vmem:[#allocation2 + $0x2c8] sm:$0xff]  ;;  %v770_v26 = vld [vmem:[#allocation2 + $0x2d8] sm:$0xff] }
 0x1b3   :  { %827 = vmatprep.subr.bf16.mxu0 %v720_v27  ;;  %913 = vmatprep.subr.bf16.mxu1 %v722_v28  ;;  %v767_v27 = vld [vmem:[#allocation2 + $0x2c0] sm:$0xff]  ;;  %v769_v28 = vld [vmem:[#allocation2 + $0x2d0] sm:$0xff] }
 0x1b6   :  { %828 = vmatpush1.bf16.msra.mxu0 %v719_v29  ;;  %914 = vmatpush1.bf16.msra.mxu1 %v721_v31  ;;  %v772_v29 = vld [vmem:[#allocation2 + $0x2e8] sm:$0xff]  ;;  %v774_v31 = vld [vmem:[#allocation2 + $0x2f8] sm:$0xff] }
 0x1b7   :  { %829 = vmatprep.subr.bf16.mxu0 %v724_v36  ;;  %915 = vmatprep.subr.bf16.mxu1 %v726_v42  ;;  %v771_v36 = vld [vmem:[#allocation2 + $0x2e0] sm:$0xff]  ;;  %v773_v42 = vld [vmem:[#allocation2 + $0x2f0] sm:$0xff] }
 0x1ba   :  { %830 = vmatpush1.bf16.msra.mxu0 %v723_v43  ;;  %916 = vmatpush1.bf16.msra.mxu1 %v725_v44  ;;  %v776_v43 = vld [vmem:[#allocation2 + $0x308] sm:$0xff]  ;;  %v778_v44 = vld [vmem:[#allocation2 + $0x318] sm:$0xff] }
 0x1bb   :  { %831 = vmatprep.subr.bf16.mxu0 %v728_v45  ;;  %917 = vmatprep.subr.bf16.mxu1 %v730_v48  ;;  %v775_v45 = vld [vmem:[#allocation2 + $0x300] sm:$0xff]  ;;  %v777_v48 = vld [vmem:[#allocation2 + $0x310] sm:$0xff] }
 0x1be   :  { %832 = vmatpush1.bf16.msra.mxu0 %v727_v49  ;;  %918 = vmatpush1.bf16.msra.mxu1 %v729_v50  ;;  %v780_v49 = vld [vmem:[#allocation2 + $0x328] sm:$0xff]  ;;  %v782_v50 = vld [vmem:[#allocation2 + $0x338] sm:$0xff] }
 0x1bf   :  { %833 = vmatprep.subr.bf16.mxu0 %v732_v54  ;;  %919 = vmatprep.subr.bf16.mxu1 %v734_v56  ;;  %v779_v54 = vld [vmem:[#allocation2 + $0x320] sm:$0xff]  ;;  %v781_v56 = vld [vmem:[#allocation2 + $0x330] sm:$0xff] }
 0x1c2   :  { %834 = vmatpush1.bf16.msra.mxu0 %v731_v58  ;;  %920 = vmatpush1.bf16.msra.mxu1 %v733_v35  ;;  %v784_v58 = vld [vmem:[#allocation2 + $0x348] sm:$0xff]  ;;  %v786_v35 = vld [vmem:[#allocation2 + $0x358] sm:$0xff] }
 0x1c3   :  { %835 = vmatprep.subr.bf16.mxu0 %v736_v60  ;;  %921 = vmatprep.subr.bf16.mxu1 %v738_v61  ;;  %v783_v60 = vld [vmem:[#allocation2 + $0x340] sm:$0xff]  ;;  %v785_v61 = vld [vmem:[#allocation2 + $0x350] sm:$0xff] }
 0x1c6   :  { %836 = vmatpush1.bf16.msra.mxu0 %v735_v62  ;;  %922 = vmatpush1.bf16.msra.mxu1 %v737_v63  ;;  %v788_v62 = vld [vmem:[#allocation2 + $0x368] sm:$0xff]  ;;  %v790_v63 = vld [vmem:[#allocation2 + $0x378] sm:$0xff] }
 0x1c7   :  { %837 = vmatprep.subr.bf16.mxu0 %v740_v0  ;;  %923 = vmatprep.subr.bf16.mxu1 %v742_v1  ;;  %v787_v0 = vld [vmem:[#allocation2 + $0x360] sm:$0xff]  ;;  %v789_v1 = vld [vmem:[#allocation2 + $0x370] sm:$0xff] }
 0x1ca   :  { %838 = vmatpush1.bf16.msra.mxu0 %v739_v51  ;;  %924 = vmatpush1.bf16.msra.mxu1 %v741_v55  ;;  %v792_v51 = vld [vmem:[#allocation2 + $0x388] sm:$0xff]  ;;  %v794_v55 = vld [vmem:[#allocation2 + $0x398] sm:$0xff] }
 0x1cb   :  { %850 = vmatprep.subr.bf16.mxu0 %v744_v38  ;;  %936 = vmatprep.subr.bf16.mxu1 %v746_v57  ;;  %v791_v38 = vld [vmem:[#allocation2 + $0x380] sm:$0xff]  ;;  %v793_v57 = vld [vmem:[#allocation2 + $0x390] sm:$0xff] }
 0x1cd   :  { %840 = vmatmul.mubr.bf16.vlgmr.msra.gmra.mrb[4].mxu0 %v675_v40  ;;  %926 = vmatmul.mubr.bf16.vlgmr.msra.gmra.mrb[4].mxu1 %v675_v40  ;;  %v796_v40 = vld [vmem:[#allocation2 + $0x3a8] sm:$0xff] }
 0x1ce   :  { %851 = vmatpush1.bf16.msra.mxu0 %v743_v39  ;;  %937 = vmatpush1.bf16.msra.mxu1 %v745_v59  ;;  %v798_v39 = vld [vmem:[#allocation2 + $0x3b8] sm:$0xff]  ;;  %v795_v59 = vld [vmem:[#allocation2 + $0x3a0] sm:$0xff] }
 0x1cf   :  { %852 = vmatprep.subr.bf16.mxu0 %v748_v41  ;;  %938 = vmatprep.subr.bf16.mxu1 %v750_v2  ;;  %v797_v41 = vld [vmem:[#allocation2 + $0x3b0] sm:$0xff]  ;;  %v800_v2 = vld [vmem:[#allocation2 + $0x3c8] sm:$0xff] }
 0x1d0   :  { %882 = vmatprep.mubr.bf16.mxu0 %v678_v46  ;;  %968 = vmatprep.mubr.bf16.mxu1 %v678_v46  ;;  %v802_v46 = vld [vmem:[#allocation2 + $0x3d8] sm:$0xff] }
 0x1d2   :  { %853 = vmatpush1.bf16.msra.mxu0 %v747_v47  ;;  %939 = vmatpush1.bf16.msra.mxu1 %v749_v5  ;;  %v799_v47 = vld [vmem:[#allocation2 + $0x3c0] sm:$0xff]  ;;  %v801_v5 = vld [vmem:[#allocation2 + $0x3d0] sm:$0xff] }
 0x1d3   :  { %854 = vmatprep.subr.bf16.mxu0 %v752_v9  ;;  %940 = vmatprep.subr.bf16.mxu1 %v754_v13  ;;  %v804_v9 = vld [vmem:[#allocation2 + $0x3e8] sm:$0xff]  ;;  %v806_v13 = vld [vmem:[#allocation2 + $0x3f8] sm:$0xff] }
 0x1d6   :  { %855 = vmatpush1.bf16.msra.mxu0 %v751_v4  ;;  %941 = vmatpush1.bf16.msra.mxu1 %v753_v12  ;;  %v803_v4 = vld [vmem:[#allocation2 + $0x3e0] sm:$0xff]  ;;  %v805_v12 = vld [vmem:[#allocation2 + $0x3f0] sm:$0xff] }
 0x1d7   :  { %856 = vmatprep.subr.bf16.mxu0 %v756_v8  ;;  %942 = vmatprep.subr.bf16.mxu1 %v758_v16  ;;  %v677_v8 = vpack.c.bf16 %v669_v24, %v665_v19 }
 0x1da   :  { %857 = vmatpush1.bf16.msra.mxu0 %v755_v17  ;;  %943 = vmatpush1.bf16.msra.mxu1 %v757_v20 }
 0x1db   :  { %858 = vmatprep.subr.bf16.mxu0 %v760_v22  ;;  %944 = vmatprep.subr.bf16.mxu1 %v762_v25 }
 0x1de   :  { %859 = vmatpush1.bf16.msra.mxu0 %v759_v52  ;;  %945 = vmatpush1.bf16.msra.mxu1 %v761_v53 }
 0x1df   :  { %860 = vmatprep.subr.bf16.mxu0 %v764_v6  ;;  %946 = vmatprep.subr.bf16.mxu1 %v766_v10 }
 0x1e2   :  { %861 = vmatpush1.bf16.msra.mxu0 %v763_v14  ;;  %947 = vmatpush1.bf16.msra.mxu1 %v765_v18 }
 0x1e3   :  { %862 = vmatprep.subr.bf16.mxu0 %v768_v23  ;;  %948 = vmatprep.subr.bf16.mxu1 %v770_v26 }
 0x1e6   :  { %863 = vmatpush1.bf16.msra.mxu0 %v767_v27  ;;  %949 = vmatpush1.bf16.msra.mxu1 %v769_v28 }
 0x1e7   :  { %864 = vmatprep.subr.bf16.mxu0 %v772_v29  ;;  %950 = vmatprep.subr.bf16.mxu1 %v774_v31 }
 0x1ea   :  { %865 = vmatpush1.bf16.msra.mxu0 %v771_v36  ;;  %951 = vmatpush1.bf16.msra.mxu1 %v773_v42 }
 0x1eb   :  { %866 = vmatprep.subr.bf16.mxu0 %v776_v43  ;;  %952 = vmatprep.subr.bf16.mxu1 %v778_v44 }
 0x1ee   :  { %867 = vmatpush1.bf16.msra.mxu0 %v775_v45  ;;  %953 = vmatpush1.bf16.msra.mxu1 %v777_v48 }
 0x1ef   :  { %868 = vmatprep.subr.bf16.mxu0 %v780_v49  ;;  %954 = vmatprep.subr.bf16.mxu1 %v782_v50 }
 0x1f2   :  { %869 = vmatpush1.bf16.msra.mxu0 %v779_v54  ;;  %955 = vmatpush1.bf16.msra.mxu1 %v781_v56 }
 0x1f3   :  { %870 = vmatprep.subr.bf16.mxu0 %v784_v58  ;;  %956 = vmatprep.subr.bf16.mxu1 %v786_v35 }
 0x1f6   :  { %871 = vmatpush1.bf16.msra.mxu0 %v783_v60  ;;  %957 = vmatpush1.bf16.msra.mxu1 %v785_v61 }
 0x1f7   :  { %872 = vmatprep.subr.bf16.mxu0 %v788_v62  ;;  %958 = vmatprep.subr.bf16.mxu1 %v790_v63 }
 0x1fa   :  { %873 = vmatpush1.bf16.msra.mxu0 %v787_v0  ;;  %959 = vmatpush1.bf16.msra.mxu1 %v789_v1 }
 0x1fb   :  { %874 = vmatprep.subr.bf16.mxu0 %v792_v51  ;;  %960 = vmatprep.subr.bf16.mxu1 %v794_v55 }
 0x1fe   :  { %875 = vmatpush1.bf16.msra.mxu0 %v791_v38  ;;  %961 = vmatpush1.bf16.msra.mxu1 %v793_v57 }
 0x1ff   :  { %876 = vmatprep.subr.bf16.mxu0 %v796_v40  ;;  %962 = vmatprep.subr.bf16.mxu1 %v798_v39 }
 0x202   :  { %877 = vmatpush1.bf16.msra.mxu0 %v795_v59  ;;  %963 = vmatpush1.bf16.msra.mxu1 %v797_v41 }
 0x203   :  { %878 = vmatprep.subr.bf16.mxu0 %v800_v2  ;;  %964 = vmatprep.subr.bf16.mxu1 %v802_v46 }
 0x206   :  { %879 = vmatpush1.bf16.msra.mxu0 %v799_v47  ;;  %965 = vmatpush1.bf16.msra.mxu1 %v801_v5 }
 0x207   :  { %880 = vmatprep.subr.bf16.mxu0 %v804_v9  ;;  %966 = vmatprep.subr.bf16.mxu1 %v806_v13 }
 0x20a   :  { %881 = vmatpush1.bf16.msra.mxu0 %v803_v4  ;;  %967 = vmatpush1.bf16.msra.mxu1 %v805_v12 }
 0x20d   :  { %883 = vmatmul.mubr.bf16.vlgmr.msra.gmra.mrb[4].mxu0 %v677_v8  ;;  %969 = vmatmul.mubr.bf16.vlgmr.msra.gmra.mrb[4].mxu1 %v677_v8 }
 0x2e0   :  { %v2526_v16 = vpop.f32.mrb[4].mxu0  ;;  %v2528_v17 = vpop.f32.mrb[4].mxu1 }
 0x2e1   :  { %v979_v20 = vmul.f32 %v2375_v37, %v2526_v16  ;;  %v981_v22 = vmul.f32 %v2375_v37, %v2528_v17  ;;  %v2534_v25 = vpop.f32.mrb[5].mxu0  ;;  %v2536_v3 = vpop.f32.mrb[5].mxu1 }
 0x2e2   :  { %v980_v7 = vmul.f32 %v2375_v37, %v2534_v25  ;;  %v982_v11 = vmul.f32 %v2375_v37, %v2536_v3  ;;  %v2542_v15 = vpop.f32.mrb[6].mxu0  ;;  %v2544_v19 = vpop.f32.mrb[6].mxu1 }
 0x2e3   :  { %v1015_v24 = vmul.f32 %v979_v20, %v2526_v16  ;;  %v1017_v52 = vmul.f32 %v981_v22, %v2528_v17  ;;  %v983_v53 = vmul.f32 0.0, %v2542_v15  ;;  %v985_v6 = vmul.f32 0.0, %v2544_v19  ;;  %v2550_v10 = vpop.f32.mrb[7].mxu0  ;;  %v2552_v14 = vpop.f32.mrb[7].mxu1 }
 0x2e4   :  { %v1016_v18 = vmul.f32 %v980_v7, %v2534_v25  ;;  %v1018_v23 = vmul.f32 %v982_v11, %v2536_v3  ;;  %v984_v26 = vmul.f32 0.0, %v2550_v10  ;;  %v986_v27 = vmul.f32 0.0, %v2552_v14 }
 0x2e5   :  { %v987_v28 = vadd.f32 %v983_v53, %v979_v20  ;;  %v1019_v29 = vmul.f32 %v983_v53, %v2542_v15  ;;  %v1001_v31 = vadd.f32 %v985_v6, %v981_v22  ;;  %v1021_v36 = vmul.f32 %v985_v6, %v2544_v19 }
 0x2e6   :  { %v994_v42 = vadd.f32 %v984_v26, %v980_v7  ;;  %v1020_v43 = vmul.f32 %v984_v26, %v2550_v10  ;;  %v1008_v44 = vadd.f32 %v986_v27, %v982_v11  ;;  %v1022_v45 = vmul.f32 %v986_v27, %v2552_v14 }
 0x2e7   :  { %v988_v48 = vrot.slane %v987_v28, 4  ;;  %v1023_v49 = vadd.f32 %v1019_v29, %v1015_v24  ;;  %v1002_v50 = vrot.slane %v1001_v31, 4  ;;  %v1037_v54 = vadd.f32 %v1021_v36, %v1017_v52 }
 0x2e8   :  { %v995_v56 = vrot.slane %v994_v42, 4  ;;  %v1030_v58 = vadd.f32 %v1020_v43, %v1016_v18  ;;  %v1009_v35 = vrot.slane %v1008_v44, 4  ;;  %v1044_v60 = vadd.f32 %v1022_v45, %v1018_v23 }
 0x2e9   :  { %v989_v61 = vadd.f32 %v988_v48, %v987_v28  ;;  %v1024_v62 = vrot.slane %v1023_v49, 4  ;;  %v1003_v63 = vadd.f32 %v1002_v50, %v1001_v31  ;;  %v1038_v0 = vrot.slane %v1037_v54, 4 }
 0x2ea   :  { %v996_v1 = vadd.f32 %v995_v56, %v994_v42  ;;  %v1031_v51 = vrot.slane %v1030_v58, 4  ;;  %v1010_v55 = vadd.f32 %v1009_v35, %v1008_v44  ;;  %v1045_v38 = vrot.slane %v1044_v60, 4 }
 0x2eb   :  { %v990_v57 = vrot.slane %v989_v61, 2  ;;  %v1025_v40 = vadd.f32 %v1024_v62, %v1023_v49  ;;  %v1004_v39 = vrot.slane %v1003_v63, 2  ;;  %v1039_v59 = vadd.f32 %v1038_v0, %v1037_v54 }
 0x2ec   :  { %v997_v41 = vrot.slane %v996_v1, 2  ;;  %v1032_v2 = vadd.f32 %v1031_v51, %v1030_v58  ;;  %v1011_v46 = vrot.slane %v1010_v55, 2  ;;  %v1046_v47 = vadd.f32 %v1045_v38, %v1044_v60 }
 0x2ed   :  { %v991_v5 = vadd.f32 %v990_v57, %v989_v61  ;;  %v1026_v9 = vrot.slane %v1025_v40, 2  ;;  %v1005_v13 = vadd.f32 %v1004_v39, %v1003_v63  ;;  %v1040_v4 = vrot.slane %v1039_v59, 2 }
 0x2ee   :  { %v998_v12 = vadd.f32 %v997_v41, %v996_v1  ;;  %v1033_v8 = vrot.slane %v1032_v2, 2  ;;  %v1012_v20 = vadd.f32 %v1011_v46, %v1010_v55  ;;  %v1047_v22 = vrot.slane %v1046_v47, 2 }
 0x2ef   :  { %v992_v7 = vrot.slane %v991_v5, 1  ;;  %v1027_v11 = vadd.f32 %v1026_v9, %v1025_v40  ;;  %v1006_v24 = vrot.slane %v1005_v13, 1  ;;  %v1041_v52 = vadd.f32 %v1040_v4, %v1039_v59 }
 0x2f0   :  { %v999_v53 = vrot.slane %v998_v12, 1  ;;  %v1034_v6 = vadd.f32 %v1033_v8, %v1032_v2  ;;  %v1013_v18 = vrot.slane %v1012_v20, 1  ;;  %v1048_v23 = vadd.f32 %v1047_v22, %v1046_v47 }
 0x2f1   :  { %v993_v26 = vadd.f32 %v992_v7, %v991_v5  ;;  %v1028_v27 = vrot.slane %v1027_v11, 1  ;;  %v1007_v28 = vadd.f32 %v1006_v24, %v1005_v13  ;;  %v1042_v29 = vrot.slane %v1041_v52, 1 }
 0x2f2   :  { %v1000_v31 = vadd.f32 %v999_v53, %v998_v12  ;;  %v1035_v36 = vrot.slane %v1034_v6, 1  ;;  %v1014_v42 = vadd.f32 %v1013_v18, %v1012_v20  ;;  %v1049_v43 = vrot.slane %v1048_v23, 1 }
 0x2f3   :  { %v1029_v44 = vadd.f32 %v1028_v27, %v1027_v11  ;;  %v1051_v45 = vmul.f32 0.25, %v993_v26  ;;  %v1043_v48 = vadd.f32 %v1042_v29, %v1041_v52  ;;  %v1053_v49 = vmul.f32 0.25, %v1007_v28  ;;  %v1072_v52 = vld [vmem:[#allocation11 + $0x2] ss:$8 sm:$0xf] }
 0x2f4   :  { %v1036_v50 = vadd.f32 %v1035_v36, %v1034_v6  ;;  %v1052_v54 = vmul.f32 0.25, %v1000_v31  ;;  %v1050_v56 = vadd.f32 %v1049_v43, %v1048_v23  ;;  %v1054_v58 = vmul.f32 0.25, %v1014_v42 }
 0x2f5   :  { %v1055_v35 = vmul.f32 0.25, %v1029_v44  ;;  %v1059_v60 = vmul.f32 %v1051_v45, %v1051_v45  ;;  %v1057_v61 = vmul.f32 0.25, %v1043_v48  ;;  %v1061_v62 = vmul.f32 %v1053_v49, %v1053_v49 }
 0x2f6   :  { %v1056_v63 = vmul.f32 0.25, %v1036_v50  ;;  %v1060_v0 = vmul.f32 %v1052_v54, %v1052_v54  ;;  %v1058_v1 = vmul.f32 0.25, %v1050_v56  ;;  %v1062_v51 = vmul.f32 %v1054_v58, %v1054_v58 }
 0x2f7   :  { %v1063_v55 = vsub.f32 %v1055_v35, %v1059_v60  ;;  %v1065_v38 = vsub.f32 %v1057_v61, %v1061_v62 }
 0x2f8   :  { %v1064_v57 = vsub.f32 %v1056_v63, %v1060_v0  ;;  %v1066_v40 = vsub.f32 %v1058_v1, %v1062_v51 }
 0x2f9   :  { %v1067_v39 = vmax.f32 %v1063_v55, 0.0  ;;  %v1069_v59 = vmax.f32 %v1065_v38, 0.0 }
 0x2fa   :  { %v1068_v41 = vmax.f32 %v1064_v57, 0.0  ;;  %v1070_v2 = vmax.f32 %v1066_v40, 0.0 }
 0x2fb   :  { %v1075_v46 = vadd.f32 1e-05, %v1067_v39  ;;  %v1077_v47 = vadd.f32 1e-05, %v1069_v59 }
 0x2fc   :  { %v1076_v5 = vadd.f32 1e-05, %v1068_v41  ;;  %v1078_v9 = vadd.f32 1e-05, %v1070_v2 }
 0x2fd   :  { %2118 = vrsqrt.f32 %v1075_v46 }
 0x2fe   :  { %2120 = vrsqrt.f32 %v1077_v47 }
 0x2ff   :  { %2122 = vrsqrt.f32 %v1076_v5 }
 0x300   :  { %2124 = vrsqrt.f32 %v1078_v9 }
 0x307   :  { %v2119_v13 = vpop.eup %2118 }
 0x308   :  { %v2121_v4 = vpop.eup %2120 }
 0x309   :  { %v2123_v12 = vpop.eup %2122 }
 0x30a   :  { %v2125_v8 = vpop.eup %2124  ;;  %v1087_v20 = vcombine.low %v2119_v13, %v2123_v12 }
 0x30b   :  { %v1088_v22 = vcombine.low %v2121_v4, %v2125_v8 }
 0x30c   :  { %v1095_v7 = vrot.slane %v1087_v20, %v2430_v21 }
 0x30d   :  { %v1102_v11 = vrot.slane %v1088_v22, %v2430_v21 }
 0x30f   :  { %v1103_v24 = vcombine.low %v1095_v7, %v1102_v11 }
 0x311   :  { %v1110_v53 = vrot.slane %v1103_v24, %v2430_v21 }
 0x313   :  { %v1112_v6 = vmul.f32 %v1110_v53, %v1072_v52 }
 0x315   :  { %v1117_v18 = vrot.slane %v1112_v6, %v2435_v30  ;;  %v1121_v23 = vrot.slane %v1112_v6, %v2439_v32  ;;  %v1125_v26 = vrot.slane %v1112_v6, %v2442_v33  ;;  %v1129_v27 = vrot.slane %v1112_v6, %v2445_v34 }
 0x317   :  { %v1134_v28 = vmul.f32 %v1117_v18, %v1051_v45  ;;  %v1135_v29 = vmul.f32 %v1121_v23, %v1052_v54  ;;  %v1136_v31 = vmul.f32 %v1125_v26, %v1053_v49  ;;  %v1137_v36 = vmul.f32 %v1129_v27, %v1054_v58 }
 0x318   :  { %v1168_v42 = vmul.f32 %v1117_v18, %v2526_v16  ;;  %v1169_v43 = vmul.f32 %v1121_v23, %v2534_v25  ;;  %v1170_v44 = vmul.f32 %v1125_v26, %v2528_v17  ;;  %v1171_v48 = vmul.f32 %v1129_v27, %v2536_v3  ;;  %v1074_v25 = vld [vmem:[#allocation11 + $0x3] ss:$8 sm:$0xf] }
 0x319   :  { %v1142_v50 = vcombine.low %v1134_v28, %v1135_v29  ;;  %v1143_v56 = vcombine.low %v1136_v31, %v1137_v36  ;;  %v1172_v35 = vmul.f32 %v1117_v18, %v2542_v15  ;;  %v1173_v60 = vmul.f32 %v1121_v23, %v2550_v10 }
 0x31a   :  { %v1174_v61 = vmul.f32 %v1125_v26, %v2544_v19  ;;  %v1175_v45 = vmul.f32 %v1129_v27, %v2552_v14 }
 0x31b   :  { %v1150_v49 = vrot.slane %v1142_v50, %v2430_v21  ;;  %v1157_v16 = vrot.slane %v1143_v56, %v2430_v21 }
 0x31d   :  { %v1158_v54 = vcombine.low %v1150_v49, %v1157_v16 }
 0x31f   :  { %v1165_v17 = vrot.slane %v1158_v54, %v2430_v21 }
 0x321   :  { %v1167_v58 = vsub.f32 %v1074_v25, %v1165_v17 }
 0x323   :  { %v1180_v3 = vrot.slane %v1167_v58, %v2435_v30  ;;  %v1184_v62 = vrot.slane %v1167_v58, %v2439_v32  ;;  %v1188_v15 = vrot.slane %v1167_v58, %v2442_v33  ;;  %v1192_v10 = vrot.slane %v1167_v58, %v2445_v34 }
 0x325   :  { %v2584_v19 = vadd.f32 %v1180_v3, %v1168_v42  ;;  %v1198_v14 = vadd.f32 %v1184_v62, %v1169_v43  ;;  %v2586_v63 = vadd.f32 %v1188_v15, %v1170_v44  ;;  %v2588_v0 = vadd.f32 %v1192_v10, %v1171_v48 }
 0x326   :  { %v2590_v1 = vadd.f32 %v1180_v3, %v1172_v35  ;;  %v1202_v51 = vadd.f32 %v1184_v62, %v1173_v60  ;;  %v2592_v55 = vadd.f32 %v1188_v15, %v1174_v61  ;;  %v2594_v38 = vadd.f32 %v1192_v10, %v1175_v45 }
 0x327   :  { %v2597_v57 = vmul.f32 0.01, %v2584_v19  ;;  %v1206_v40 = vmul.f32 0.01, %v1198_v14  ;;  %v2600_v39 = vmul.f32 0.01, %v2586_v63 }
 0x328   :  { %v2603_v59 = vmul.f32 0.01, %v2588_v0  ;;  %v2606_v41 = vmul.f32 0.01, %v2590_v1  ;;  %v1210_v2 = vmul.f32 0.01, %v1202_v51 }
 0x329   :  { %v2609_v46 = vmul.f32 0.01, %v2592_v55  ;;  %v2612_v47 = vmul.f32 0.01, %v2594_v38  ;;  %v1213_v5 = vmax.f32 %v2584_v19, %v2597_v57  ;;  %v1214_v9 = vmax.f32 %v1198_v14, %v1206_v40 }
 0x32a   :  { %v1215_v13 = vmax.f32 %v2586_v63, %v2600_v39  ;;  %v1216_v4 = vmax.f32 %v2588_v0, %v2603_v59  ;;  %v1217_v12 = vmax.f32 %v2590_v1, %v2606_v41  ;;  %v1218_v8 = vmax.f32 %v1202_v51, %v1210_v2 }
 0x32b   :  { %v1219_v20 = vmax.f32 %v2592_v55, %v2609_v46  ;;  %v1220_v22 = vmax.f32 %v2594_v38, %v2612_v47 }
 0x32c   :  { %2250 = dma.done.wait [#allocation5 + $0x1], 16384 }
 0x32d   :  { %2251 = vsyncadd [#allocation5 + $0x1], 4294950912  ;;  %v1224_v7 = vpack.c.bf16 %v1218_v8, %v1214_v9  ;;  %v1228_v11 = vld [vmem:[#allocation3 + $0x8] sm:$0xff]  ;;  %v1230_v24 = vld [vmem:[#allocation3 + $0x18] sm:$0xff] }
 0x32e   :  { %v1227_v52 = vld [vmem:[#allocation3] sm:$0xff]  ;;  %1355 = vmatprep.subr.bf16.mxu0 %v1228_v11  ;;  %1441 = vmatprep.subr.bf16.mxu1 %v1230_v24  ;;  %v1229_v53 = vld [vmem:[#allocation3 + $0x10] sm:$0xff]  ;;  %v1232_v6 = vld [vmem:[#allocation3 + $0x28] sm:$0xff] }
 0x32f   :  { %1387 = vmatprep.mubr.bf16.mxu0 %v1224_v7  ;;  %1473 = vmatprep.mubr.bf16.mxu1 %v1224_v7  ;;  %v1234_v18 = vld [vmem:[#allocation3 + $0x38] sm:$0xff]  ;;  %v1231_v23 = vld [vmem:[#allocation3 + $0x20] sm:$0xff]  ;;  %v1233_v26 = vld [vmem:[#allocation3 + $0x30] sm:$0xff] }
 0x330   :  { %1356 = vmatpush1.bf16.msra.mxu0 %v1227_v52  ;;  %1442 = vmatpush1.bf16.msra.mxu1 %v1229_v53  ;;  %v1236_v27 = vld [vmem:[#allocation3 + $0x48] sm:$0xff]  ;;  %v1238_v28 = vld [vmem:[#allocation3 + $0x58] sm:$0xff]  ;;  %v1235_v29 = vld [vmem:[#allocation3 + $0x40] sm:$0xff] }
 0x331   :  { %1357 = vmatprep.subr.bf16.mxu0 %v1232_v6  ;;  %1443 = vmatprep.subr.bf16.mxu1 %v1234_v18  ;;  %v1237_v31 = vld [vmem:[#allocation3 + $0x50] sm:$0xff]  ;;  %v1240_v36 = vld [vmem:[#allocation3 + $0x68] sm:$0xff]  ;;  %v1242_v42 = vld [vmem:[#allocation3 + $0x78] sm:$0xff] }
 0x332   :  { %v1239_v43 = vld [vmem:[#allocation3 + $0x60] sm:$0xff]  ;;  %v1241_v44 = vld [vmem:[#allocation3 + $0x70] sm:$0xff]  ;;  %v1244_v48 = vld [vmem:[#allocation3 + $0x88] sm:$0xff] }
 0x333   :  { %v1246_v50 = vld [vmem:[#allocation3 + $0x98] sm:$0xff]  ;;  %v1243_v56 = vld [vmem:[#allocation3 + $0x80] sm:$0xff]  ;;  %v1245_v35 = vld [vmem:[#allocation3 + $0x90] sm:$0xff] }
 0x334   :  { %1358 = vmatpush1.bf16.msra.mxu0 %v1231_v23  ;;  %1444 = vmatpush1.bf16.msra.mxu1 %v1233_v26  ;;  %v1248_v60 = vld [vmem:[#allocation3 + $0xa8] sm:$0xff]  ;;  %v1250_v61 = vld [vmem:[#allocation3 + $0xb8] sm:$0xff]  ;;  %v1247_v45 = vld [vmem:[#allocation3 + $0xa0] sm:$0xff] }
 0x335   :  { %1359 = vmatprep.subr.bf16.mxu0 %v1236_v27  ;;  %1445 = vmatprep.subr.bf16.mxu1 %v1238_v28  ;;  %v1249_v49 = vld [vmem:[#allocation3 + $0xb0] sm:$0xff]  ;;  %v1252_v16 = vld [vmem:[#allocation3 + $0xc8] sm:$0xff]  ;;  %v1254_v54 = vld [vmem:[#allocation3 + $0xd8] sm:$0xff] }
 0x336   :  { %v1251_v25 = vld [vmem:[#allocation3 + $0xc0] sm:$0xff]  ;;  %v1253_v17 = vld [vmem:[#allocation3 + $0xd0] sm:$0xff]  ;;  %v1256_v58 = vld [vmem:[#allocation3 + $0xe8] sm:$0xff] }
 0x337   :  { %v1258_v3 = vld [vmem:[#allocation3 + $0xf8] sm:$0xff]  ;;  %v1255_v62 = vld [vmem:[#allocation3 + $0xe0] sm:$0xff]  ;;  %v1257_v15 = vld [vmem:[#allocation3 + $0xf0] sm:$0xff] }
 0x338   :  { %1360 = vmatpush1.bf16.msra.mxu0 %v1235_v29  ;;  %1446 = vmatpush1.bf16.msra.mxu1 %v1237_v31  ;;  %v1260_v10 = vld [vmem:[#allocation3 + $0x108] sm:$0xff]  ;;  %v1262_v14 = vld [vmem:[#allocation3 + $0x118] sm:$0xff]  ;;  %v1259_v51 = vld [vmem:[#allocation3 + $0x100] sm:$0xff] }
 0x339   :  { %1361 = vmatprep.subr.bf16.mxu0 %v1240_v36  ;;  %1447 = vmatprep.subr.bf16.mxu1 %v1242_v42  ;;  %v1261_v40 = vld [vmem:[#allocation3 + $0x110] sm:$0xff]  ;;  %v1264_v2 = vld [vmem:[#allocation3 + $0x128] sm:$0xff]  ;;  %v1266_v9 = vld [vmem:[#allocation3 + $0x138] sm:$0xff] }
 0x33a   :  { %v1263_v8 = vld [vmem:[#allocation3 + $0x120] sm:$0xff]  ;;  %v1265_v7 = vld [vmem:[#allocation3 + $0x130] sm:$0xff]  ;;  %v1268_v11 = vld [vmem:[#allocation3 + $0x148] sm:$0xff] }
 0x33b   :  { %v1270_v24 = vld [vmem:[#allocation3 + $0x158] sm:$0xff]  ;;  %v1267_v52 = vld [vmem:[#allocation3 + $0x140] sm:$0xff]  ;;  %v1269_v53 = vld [vmem:[#allocation3 + $0x150] sm:$0xff] }
 0x33c   :  { %1362 = vmatpush1.bf16.msra.mxu0 %v1239_v43  ;;  %1448 = vmatpush1.bf16.msra.mxu1 %v1241_v44  ;;  %v1272_v6 = vld [vmem:[#allocation3 + $0x168] sm:$0xff]  ;;  %v1274_v18 = vld [vmem:[#allocation3 + $0x178] sm:$0xff]  ;;  %v1271_v23 = vld [vmem:[#allocation3 + $0x160] sm:$0xff] }
 0x33d   :  { %1363 = vmatprep.subr.bf16.mxu0 %v1244_v48  ;;  %1449 = vmatprep.subr.bf16.mxu1 %v1246_v50  ;;  %v1273_v26 = vld [vmem:[#allocation3 + $0x170] sm:$0xff]  ;;  %v1276_v27 = vld [vmem:[#allocation3 + $0x188] sm:$0xff]  ;;  %v1278_v28 = vld [vmem:[#allocation3 + $0x198] sm:$0xff] }
 0x33e   :  { %v1275_v29 = vld [vmem:[#allocation3 + $0x180] sm:$0xff]  ;;  %v1277_v31 = vld [vmem:[#allocation3 + $0x190] sm:$0xff]  ;;  %v1280_v36 = vld [vmem:[#allocation3 + $0x1a8] sm:$0xff] }
 0x33f   :  { %v1282_v42 = vld [vmem:[#allocation3 + $0x1b8] sm:$0xff]  ;;  %v1279_v43 = vld [vmem:[#allocation3 + $0x1a0] sm:$0xff]  ;;  %v1281_v44 = vld [vmem:[#allocation3 + $0x1b0] sm:$0xff] }
 0x340   :  { %1364 = vmatpush1.bf16.msra.mxu0 %v1243_v56  ;;  %1450 = vmatpush1.bf16.msra.mxu1 %v1245_v35  ;;  %v1284_v48 = vld [vmem:[#allocation3 + $0x1c8] sm:$0xff]  ;;  %v1286_v50 = vld [vmem:[#allocation3 + $0x1d8] sm:$0xff]  ;;  %v1283_v56 = vld [vmem:[#allocation3 + $0x1c0] sm:$0xff] }
 0x341   :  { %1365 = vmatprep.subr.bf16.mxu0 %v1248_v60  ;;  %1451 = vmatprep.subr.bf16.mxu1 %v1250_v61  ;;  %v1285_v35 = vld [vmem:[#allocation3 + $0x1d0] sm:$0xff]  ;;  %v1288_v60 = vld [vmem:[#allocation3 + $0x1e8] sm:$0xff]  ;;  %v1290_v61 = vld [vmem:[#allocation3 + $0x1f8] sm:$0xff] }
 0x342   :  { %v1295_v19 = vld [vmem:[#allocation3 + $0x220] sm:$0xff]  ;;  %v1297_v1 = vld [vmem:[#allocation3 + $0x230] sm:$0xff]  ;;  %v1300_v57 = vld [vmem:[#allocation3 + $0x248] sm:$0xff] }
 0x343   :  { %v1302_v41 = vld [vmem:[#allocation3 + $0x258] sm:$0xff]  ;;  %v1299_v0 = vld [vmem:[#allocation3 + $0x240] sm:$0xff]  ;;  %v1301_v59 = vld [vmem:[#allocation3 + $0x250] sm:$0xff] }
 0x344   :  { %1366 = vmatpush1.bf16.msra.mxu0 %v1247_v45  ;;  %1452 = vmatpush1.bf16.msra.mxu1 %v1249_v49  ;;  %v1287_v45 = vld [vmem:[#allocation3 + $0x1e0] sm:$0xff]  ;;  %v1289_v49 = vld [vmem:[#allocation3 + $0x1f0] sm:$0xff]  ;;  %v1304_v38 = vld [vmem:[#allocation3 + $0x268] sm:$0xff] }
 0x345   :  { %1367 = vmatprep.subr.bf16.mxu0 %v1252_v16  ;;  %1453 = vmatprep.subr.bf16.mxu1 %v1254_v54  ;;  %v1292_v16 = vld [vmem:[#allocation3 + $0x208] sm:$0xff]  ;;  %v1294_v54 = vld [vmem:[#allocation3 + $0x218] sm:$0xff] }
 0x346   :  { %v1306_v47 = vld [vmem:[#allocation3 + $0x278] sm:$0xff] }
 0x348   :  { %1368 = vmatpush1.bf16.msra.mxu0 %v1251_v25  ;;  %1454 = vmatpush1.bf16.msra.mxu1 %v1253_v17  ;;  %v1223_v25 = vpack.c.bf16 %v1217_v12, %v1213_v5  ;;  %v1291_v17 = vld [vmem:[#allocation3 + $0x200] sm:$0xff]  ;;  %v1308_v12 = vld [vmem:[#allocation3 + $0x288] sm:$0xff] }
 0x349   :  { %1369 = vmatprep.subr.bf16.mxu0 %v1256_v58  ;;  %1455 = vmatprep.subr.bf16.mxu1 %v1258_v3  ;;  %v1293_v58 = vld [vmem:[#allocation3 + $0x210] sm:$0xff]  ;;  %v1296_v3 = vld [vmem:[#allocation3 + $0x228] sm:$0xff]  ;;  %v1303_v5 = vld [vmem:[#allocation3 + $0x260] sm:$0xff] }
 0x34c   :  { %1370 = vmatpush1.bf16.msra.mxu0 %v1255_v62  ;;  %1456 = vmatpush1.bf16.msra.mxu1 %v1257_v15  ;;  %v1298_v62 = vld [vmem:[#allocation3 + $0x238] sm:$0xff]  ;;  %v1226_v15 = vpack.c.bf16 %v1220_v22, %v1216_v4  ;;  %v1305_v4 = vld [vmem:[#allocation3 + $0x270] sm:$0xff] }
 0x34d   :  { %1371 = vmatprep.subr.bf16.mxu0 %v1260_v10  ;;  %1457 = vmatprep.subr.bf16.mxu1 %v1262_v14  ;;  %v1310_v22 = vld [vmem:[#allocation3 + $0x298] sm:$0xff]  ;;  %v1307_v10 = vld [vmem:[#allocation3 + $0x280] sm:$0xff]  ;;  %v1309_v14 = vld [vmem:[#allocation3 + $0x290] sm:$0xff] }
 0x350   :  { %1372 = vmatpush1.bf16.msra.mxu0 %v1259_v51  ;;  %1458 = vmatpush1.bf16.msra.mxu1 %v1261_v40  ;;  %v1312_v51 = vld [vmem:[#allocation3 + $0x2a8] sm:$0xff]  ;;  %v1314_v40 = vld [vmem:[#allocation3 + $0x2b8] sm:$0xff] }
 0x351   :  { %1373 = vmatprep.subr.bf16.mxu0 %v1264_v2  ;;  %1459 = vmatprep.subr.bf16.mxu1 %v1266_v9  ;;  %v1311_v2 = vld [vmem:[#allocation3 + $0x2a0] sm:$0xff]  ;;  %v1313_v9 = vld [vmem:[#allocation3 + $0x2b0] sm:$0xff] }
 0x354   :  { %1374 = vmatpush1.bf16.msra.mxu0 %v1263_v8  ;;  %1460 = vmatpush1.bf16.msra.mxu1 %v1265_v7  ;;  %v1316_v8 = vld [vmem:[#allocation3 + $0x2c8] sm:$0xff]  ;;  %v1318_v7 = vld [vmem:[#allocation3 + $0x2d8] sm:$0xff] }
 0x355   :  { %1375 = vmatprep.subr.bf16.mxu0 %v1268_v11  ;;  %1461 = vmatprep.subr.bf16.mxu1 %v1270_v24  ;;  %v1315_v11 = vld [vmem:[#allocation3 + $0x2c0] sm:$0xff]  ;;  %v1317_v24 = vld [vmem:[#allocation3 + $0x2d0] sm:$0xff] }
 0x358   :  { %1376 = vmatpush1.bf16.msra.mxu0 %v1267_v52  ;;  %1462 = vmatpush1.bf16.msra.mxu1 %v1269_v53  ;;  %v1320_v52 = vld [vmem:[#allocation3 + $0x2e8] sm:$0xff]  ;;  %v1322_v53 = vld [vmem:[#allocation3 + $0x2f8] sm:$0xff] }
 0x359   :  { %1377 = vmatprep.subr.bf16.mxu0 %v1272_v6  ;;  %1463 = vmatprep.subr.bf16.mxu1 %v1274_v18  ;;  %v1319_v6 = vld [vmem:[#allocation3 + $0x2e0] sm:$0xff]  ;;  %v1321_v18 = vld [vmem:[#allocation3 + $0x2f0] sm:$0xff] }
 0x35c   :  { %1378 = vmatpush1.bf16.msra.mxu0 %v1271_v23  ;;  %1464 = vmatpush1.bf16.msra.mxu1 %v1273_v26  ;;  %v1324_v23 = vld [vmem:[#allocation3 + $0x308] sm:$0xff]  ;;  %v1326_v26 = vld [vmem:[#allocation3 + $0x318] sm:$0xff] }
 0x35d   :  { %1379 = vmatprep.subr.bf16.mxu0 %v1276_v27  ;;  %1465 = vmatprep.subr.bf16.mxu1 %v1278_v28  ;;  %v1323_v27 = vld [vmem:[#allocation3 + $0x300] sm:$0xff]  ;;  %v1325_v28 = vld [vmem:[#allocation3 + $0x310] sm:$0xff] }
 0x360   :  { %1380 = vmatpush1.bf16.msra.mxu0 %v1275_v29  ;;  %1466 = vmatpush1.bf16.msra.mxu1 %v1277_v31  ;;  %v1328_v29 = vld [vmem:[#allocation3 + $0x328] sm:$0xff]  ;;  %v1330_v31 = vld [vmem:[#allocation3 + $0x338] sm:$0xff] }
 0x361   :  { %1381 = vmatprep.subr.bf16.mxu0 %v1280_v36  ;;  %1467 = vmatprep.subr.bf16.mxu1 %v1282_v42  ;;  %v1327_v36 = vld [vmem:[#allocation3 + $0x320] sm:$0xff]  ;;  %v1329_v42 = vld [vmem:[#allocation3 + $0x330] sm:$0xff] }
 0x364   :  { %1382 = vmatpush1.bf16.msra.mxu0 %v1279_v43  ;;  %1468 = vmatpush1.bf16.msra.mxu1 %v1281_v44  ;;  %v1332_v43 = vld [vmem:[#allocation3 + $0x348] sm:$0xff]  ;;  %v1334_v44 = vld [vmem:[#allocation3 + $0x358] sm:$0xff] }
 0x365   :  { %1383 = vmatprep.subr.bf16.mxu0 %v1284_v48  ;;  %1469 = vmatprep.subr.bf16.mxu1 %v1286_v50  ;;  %v1331_v48 = vld [vmem:[#allocation3 + $0x340] sm:$0xff]  ;;  %v1333_v50 = vld [vmem:[#allocation3 + $0x350] sm:$0xff] }
 0x368   :  { %1384 = vmatpush1.bf16.msra.mxu0 %v1283_v56  ;;  %1470 = vmatpush1.bf16.msra.mxu1 %v1285_v35  ;;  %v1336_v56 = vld [vmem:[#allocation3 + $0x368] sm:$0xff]  ;;  %v1338_v35 = vld [vmem:[#allocation3 + $0x378] sm:$0xff] }
 0x369   :  { %1385 = vmatprep.subr.bf16.mxu0 %v1288_v60  ;;  %1471 = vmatprep.subr.bf16.mxu1 %v1290_v61  ;;  %v1335_v60 = vld [vmem:[#allocation3 + $0x360] sm:$0xff]  ;;  %v1337_v61 = vld [vmem:[#allocation3 + $0x370] sm:$0xff] }
 0x36c   :  { %1386 = vmatpush1.bf16.msra.mxu0 %v1287_v45  ;;  %1472 = vmatpush1.bf16.msra.mxu1 %v1289_v49  ;;  %v1340_v45 = vld [vmem:[#allocation3 + $0x388] sm:$0xff]  ;;  %v1342_v49 = vld [vmem:[#allocation3 + $0x398] sm:$0xff] }
 0x36d   :  { %1398 = vmatprep.subr.bf16.mxu0 %v1292_v16  ;;  %1484 = vmatprep.subr.bf16.mxu1 %v1294_v54  ;;  %v1339_v16 = vld [vmem:[#allocation3 + $0x380] sm:$0xff]  ;;  %v1341_v54 = vld [vmem:[#allocation3 + $0x390] sm:$0xff] }
 0x36f   :  { %1388 = vmatmul.mubr.bf16.vlgmr.msra.gmra.mrb[8].mxu0 %v1223_v25  ;;  %1474 = vmatmul.mubr.bf16.vlgmr.msra.gmra.mrb[8].mxu1 %v1223_v25  ;;  %v1344_v25 = vld [vmem:[#allocation3 + $0x3a8] sm:$0xff] }
 0x370   :  { %1399 = vmatpush1.bf16.msra.mxu0 %v1291_v17  ;;  %1485 = vmatpush1.bf16.msra.mxu1 %v1293_v58  ;;  %v1346_v17 = vld [vmem:[#allocation3 + $0x3b8] sm:$0xff]  ;;  %v1343_v58 = vld [vmem:[#allocation3 + $0x3a0] sm:$0xff] }
 0x371   :  { %1400 = vmatprep.subr.bf16.mxu0 %v1296_v3  ;;  %1486 = vmatprep.subr.bf16.mxu1 %v1298_v62  ;;  %v1345_v3 = vld [vmem:[#allocation3 + $0x3b0] sm:$0xff]  ;;  %v1348_v62 = vld [vmem:[#allocation3 + $0x3c8] sm:$0xff] }
 0x372   :  { %1430 = vmatprep.mubr.bf16.mxu0 %v1226_v15  ;;  %1516 = vmatprep.mubr.bf16.mxu1 %v1226_v15  ;;  %v1350_v15 = vld [vmem:[#allocation3 + $0x3d8] sm:$0xff] }
 0x374   :  { %1401 = vmatpush1.bf16.msra.mxu0 %v1295_v19  ;;  %1487 = vmatpush1.bf16.msra.mxu1 %v1297_v1  ;;  %v1347_v19 = vld [vmem:[#allocation3 + $0x3c0] sm:$0xff]  ;;  %v1349_v1 = vld [vmem:[#allocation3 + $0x3d0] sm:$0xff] }
 0x375   :  { %1402 = vmatprep.subr.bf16.mxu0 %v1300_v57  ;;  %1488 = vmatprep.subr.bf16.mxu1 %v1302_v41  ;;  %v1352_v57 = vld [vmem:[#allocation3 + $0x3e8] sm:$0xff]  ;;  %v1354_v41 = vld [vmem:[#allocation3 + $0x3f8] sm:$0xff] }
 0x378   :  { %1403 = vmatpush1.bf16.msra.mxu0 %v1299_v0  ;;  %1489 = vmatpush1.bf16.msra.mxu1 %v1301_v59  ;;  %v1351_v0 = vld [vmem:[#allocation3 + $0x3e0] sm:$0xff]  ;;  %v1353_v59 = vld [vmem:[#allocation3 + $0x3f0] sm:$0xff] }
 0x379   :  { %1404 = vmatprep.subr.bf16.mxu0 %v1304_v38  ;;  %1490 = vmatprep.subr.bf16.mxu1 %v1306_v47  ;;  %v1225_v38 = vpack.c.bf16 %v1219_v20, %v1215_v13 }
 0x37c   :  { %1405 = vmatpush1.bf16.msra.mxu0 %v1303_v5  ;;  %1491 = vmatpush1.bf16.msra.mxu1 %v1305_v4 }
 0x37d   :  { %1406 = vmatprep.subr.bf16.mxu0 %v1308_v12  ;;  %1492 = vmatprep.subr.bf16.mxu1 %v1310_v22 }
 0x380   :  { %1407 = vmatpush1.bf16.msra.mxu0 %v1307_v10  ;;  %1493 = vmatpush1.bf16.msra.mxu1 %v1309_v14 }
 0x381   :  { %1408 = vmatprep.subr.bf16.mxu0 %v1312_v51  ;;  %1494 = vmatprep.subr.bf16.mxu1 %v1314_v40 }
 0x384   :  { %1409 = vmatpush1.bf16.msra.mxu0 %v1311_v2  ;;  %1495 = vmatpush1.bf16.msra.mxu1 %v1313_v9 }
 0x385   :  { %1410 = vmatprep.subr.bf16.mxu0 %v1316_v8  ;;  %1496 = vmatprep.subr.bf16.mxu1 %v1318_v7 }
 0x388   :  { %1411 = vmatpush1.bf16.msra.mxu0 %v1315_v11  ;;  %1497 = vmatpush1.bf16.msra.mxu1 %v1317_v24 }
 0x389   :  { %1412 = vmatprep.subr.bf16.mxu0 %v1320_v52  ;;  %1498 = vmatprep.subr.bf16.mxu1 %v1322_v53 }
 0x38c   :  { %1413 = vmatpush1.bf16.msra.mxu0 %v1319_v6  ;;  %1499 = vmatpush1.bf16.msra.mxu1 %v1321_v18 }
 0x38d   :  { %1414 = vmatprep.subr.bf16.mxu0 %v1324_v23  ;;  %1500 = vmatprep.subr.bf16.mxu1 %v1326_v26 }
 0x390   :  { %1415 = vmatpush1.bf16.msra.mxu0 %v1323_v27  ;;  %1501 = vmatpush1.bf16.msra.mxu1 %v1325_v28 }
 0x391   :  { %1416 = vmatprep.subr.bf16.mxu0 %v1328_v29  ;;  %1502 = vmatprep.subr.bf16.mxu1 %v1330_v31 }
 0x394   :  { %1417 = vmatpush1.bf16.msra.mxu0 %v1327_v36  ;;  %1503 = vmatpush1.bf16.msra.mxu1 %v1329_v42 }
 0x395   :  { %1418 = vmatprep.subr.bf16.mxu0 %v1332_v43  ;;  %1504 = vmatprep.subr.bf16.mxu1 %v1334_v44 }
 0x398   :  { %1419 = vmatpush1.bf16.msra.mxu0 %v1331_v48  ;;  %1505 = vmatpush1.bf16.msra.mxu1 %v1333_v50 }
 0x399   :  { %1420 = vmatprep.subr.bf16.mxu0 %v1336_v56  ;;  %1506 = vmatprep.subr.bf16.mxu1 %v1338_v35 }
 0x39c   :  { %1421 = vmatpush1.bf16.msra.mxu0 %v1335_v60  ;;  %1507 = vmatpush1.bf16.msra.mxu1 %v1337_v61 }
 0x39d   :  { %1422 = vmatprep.subr.bf16.mxu0 %v1340_v45  ;;  %1508 = vmatprep.subr.bf16.mxu1 %v1342_v49 }
 0x3a0   :  { %1423 = vmatpush1.bf16.msra.mxu0 %v1339_v16  ;;  %1509 = vmatpush1.bf16.msra.mxu1 %v1341_v54 }
 0x3a1   :  { %1424 = vmatprep.subr.bf16.mxu0 %v1344_v25  ;;  %1510 = vmatprep.subr.bf16.mxu1 %v1346_v17 }
 0x3a4   :  { %1425 = vmatpush1.bf16.msra.mxu0 %v1343_v58  ;;  %1511 = vmatpush1.bf16.msra.mxu1 %v1345_v3 }
 0x3a5   :  { %1426 = vmatprep.subr.bf16.mxu0 %v1348_v62  ;;  %1512 = vmatprep.subr.bf16.mxu1 %v1350_v15 }
 0x3a8   :  { %1427 = vmatpush1.bf16.msra.mxu0 %v1347_v19  ;;  %1513 = vmatpush1.bf16.msra.mxu1 %v1349_v1 }
 0x3a9   :  { %1428 = vmatprep.subr.bf16.mxu0 %v1352_v57  ;;  %1514 = vmatprep.subr.bf16.mxu1 %v1354_v41 }
 0x3ac   :  { %1429 = vmatpush1.bf16.msra.mxu0 %v1351_v0  ;;  %1515 = vmatpush1.bf16.msra.mxu1 %v1353_v59 }
 0x3af   :  { %1431 = vmatmul.mubr.bf16.vlgmr.msra.gmra.mrb[8].mxu0 %v1225_v38  ;;  %1517 = vmatmul.mubr.bf16.vlgmr.msra.gmra.mrb[8].mxu1 %v1225_v38 }
 0x482   :  { %v2644_v47 = vpop.f32.mrb[8].mxu0  ;;  %v2646_v5 = vpop.f32.mrb[8].mxu1 }
 0x483   :  { %v1527_v4 = vmul.f32 %v2375_v37, %v2644_v47  ;;  %v1529_v12 = vmul.f32 %v2375_v37, %v2646_v5  ;;  %v2652_v22 = vpop.f32.mrb[9].mxu0  ;;  %v2654_v63 = vpop.f32.mrb[9].mxu1 }
 0x484   :  { %v1528_v55 = vmul.f32 %v2375_v37, %v2652_v22  ;;  %v1530_v39 = vmul.f32 %v2375_v37, %v2654_v63  ;;  %v2660_v46 = vpop.f32.mrb[10].mxu0  ;;  %v2662_v13 = vpop.f32.mrb[10].mxu1 }
 0x485   :  { %v1563_v20 = vmul.f32 %v1527_v4, %v2644_v47  ;;  %v1565_v10 = vmul.f32 %v1529_v12, %v2646_v5  ;;  %v1531_v14 = vmul.f32 0.0, %v2660_v46  ;;  %v1533_v51 = vmul.f32 0.0, %v2662_v13  ;;  %v2668_v40 = vpop.f32.mrb[11].mxu0  ;;  %v2670_v2 = vpop.f32.mrb[11].mxu1 }
 0x486   :  { %v1564_v9 = vmul.f32 %v1528_v55, %v2652_v22  ;;  %v1566_v37 = vmul.f32 %v1530_v39, %v2654_v63  ;;  %v1532_v8 = vmul.f32 0.0, %v2668_v40  ;;  %v1534_v7 = vmul.f32 0.0, %v2670_v2 }
 0x487   :  { %v1535_v11 = vadd.f32 %v1531_v14, %v1527_v4  ;;  %v1567_v24 = vmul.f32 %v1531_v14, %v2660_v46  ;;  %v1549_v52 = vadd.f32 %v1533_v51, %v1529_v12  ;;  %v1569_v53 = vmul.f32 %v1533_v51, %v2662_v13 }
 0x488   :  { %v1542_v6 = vadd.f32 %v1532_v8, %v1528_v55  ;;  %v1568_v18 = vmul.f32 %v1532_v8, %v2668_v40  ;;  %v1556_v23 = vadd.f32 %v1534_v7, %v1530_v39  ;;  %v1570_v26 = vmul.f32 %v1534_v7, %v2670_v2 }
 0x489   :  { %v1536_v27 = vrot.slane %v1535_v11, 4  ;;  %v1571_v28 = vadd.f32 %v1567_v24, %v1563_v20  ;;  %v1550_v29 = vrot.slane %v1549_v52, 4  ;;  %v1585_v31 = vadd.f32 %v1569_v53, %v1565_v10 }
 0x48a   :  { %v1543_v36 = vrot.slane %v1542_v6, 4  ;;  %v1578_v42 = vadd.f32 %v1568_v18, %v1564_v9  ;;  %v1557_v43 = vrot.slane %v1556_v23, 4  ;;  %v1592_v44 = vadd.f32 %v1570_v26, %v1566_v37 }
 0x48b   :  { %v1537_v48 = vadd.f32 %v1536_v27, %v1535_v11  ;;  %v1572_v50 = vrot.slane %v1571_v28, 4  ;;  %v1551_v56 = vadd.f32 %v1550_v29, %v1549_v52  ;;  %v1586_v35 = vrot.slane %v1585_v31, 4 }
 0x48c   :  { %v1544_v60 = vadd.f32 %v1543_v36, %v1542_v6  ;;  %v1579_v61 = vrot.slane %v1578_v42, 4  ;;  %v1558_v45 = vadd.f32 %v1557_v43, %v1556_v23  ;;  %v1593_v49 = vrot.slane %v1592_v44, 4 }
 0x48d   :  { %v1538_v16 = vrot.slane %v1537_v48, 2  ;;  %v1573_v54 = vadd.f32 %v1572_v50, %v1571_v28  ;;  %v1552_v25 = vrot.slane %v1551_v56, 2  ;;  %v1587_v17 = vadd.f32 %v1586_v35, %v1585_v31 }
 0x48e   :  { %v1545_v58 = vrot.slane %v1544_v60, 2  ;;  %v1580_v3 = vadd.f32 %v1579_v61, %v1578_v42  ;;  %v1559_v62 = vrot.slane %v1558_v45, 2  ;;  %v1594_v15 = vadd.f32 %v1593_v49, %v1592_v44 }
 0x48f   :  { %v1539_v19 = vadd.f32 %v1538_v16, %v1537_v48  ;;  %v1574_v1 = vrot.slane %v1573_v54, 2  ;;  %v1553_v57 = vadd.f32 %v1552_v25, %v1551_v56  ;;  %v1588_v41 = vrot.slane %v1587_v17, 2 }
 0x490   :  { %v1546_v0 = vadd.f32 %v1545_v58, %v1544_v60  ;;  %v1581_v59 = vrot.slane %v1580_v3, 2  ;;  %v1560_v38 = vadd.f32 %v1559_v62, %v1558_v45  ;;  %v1595_v4 = vrot.slane %v1594_v15, 2 }
 0x491   :  { %v1540_v12 = vrot.slane %v1539_v19, 1  ;;  %v1575_v55 = vadd.f32 %v1574_v1, %v1573_v54  ;;  %v1554_v39 = vrot.slane %v1553_v57, 1  ;;  %v1589_v20 = vadd.f32 %v1588_v41, %v1587_v17 }
 0x492   :  { %v1547_v10 = vrot.slane %v1546_v0, 1  ;;  %v1582_v14 = vadd.f32 %v1581_v59, %v1580_v3  ;;  %v1561_v51 = vrot.slane %v1560_v38, 1  ;;  %v1596_v9 = vadd.f32 %v1595_v4, %v1594_v15 }
 0x493   :  { %v1541_v37 = vadd.f32 %v1540_v12, %v1539_v19  ;;  %v1576_v8 = vrot.slane %v1575_v55, 1  ;;  %v1555_v7 = vadd.f32 %v1554_v39, %v1553_v57  ;;  %v1590_v11 = vrot.slane %v1589_v20, 1  ;;  %v1620_v39 = vld [vmem:[#allocation11 + $0x4] ss:$8 sm:$0xf] }
 0x494   :  { %v1548_v24 = vadd.f32 %v1547_v10, %v1546_v0  ;;  %v1583_v52 = vrot.slane %v1582_v14, 1  ;;  %v1562_v53 = vadd.f32 %v1561_v51, %v1560_v38  ;;  %v1597_v6 = vrot.slane %v1596_v9, 1 }
 0x495   :  { %v1577_v18 = vadd.f32 %v1576_v8, %v1575_v55  ;;  %v1599_v23 = vmul.f32 0.25, %v1541_v37  ;;  %v1591_v26 = vadd.f32 %v1590_v11, %v1589_v20  ;;  %v1601_v27 = vmul.f32 0.25, %v1555_v7 }
 0x496   :  { %v1584_v28 = vadd.f32 %v1583_v52, %v1582_v14  ;;  %v1600_v29 = vmul.f32 0.25, %v1548_v24  ;;  %v1598_v31 = vadd.f32 %v1597_v6, %v1596_v9  ;;  %v1602_v36 = vmul.f32 0.25, %v1562_v53 }
 0x497   :  { %v1603_v42 = vmul.f32 0.25, %v1577_v18  ;;  %v1607_v43 = vmul.f32 %v1599_v23, %v1599_v23  ;;  %v1605_v44 = vmul.f32 0.25, %v1591_v26  ;;  %v1609_v48 = vmul.f32 %v1601_v27, %v1601_v27 }
 0x498   :  { %v1604_v50 = vmul.f32 0.25, %v1584_v28  ;;  %v1608_v56 = vmul.f32 %v1600_v29, %v1600_v29  ;;  %v1606_v35 = vmul.f32 0.25, %v1598_v31  ;;  %v1610_v60 = vmul.f32 %v1602_v36, %v1602_v36 }
 0x499   :  { %v1611_v61 = vsub.f32 %v1603_v42, %v1607_v43  ;;  %v1613_v45 = vsub.f32 %v1605_v44, %v1609_v48 }
 0x49a   :  { %v1612_v49 = vsub.f32 %v1604_v50, %v1608_v56  ;;  %v1614_v16 = vsub.f32 %v1606_v35, %v1610_v60 }
 0x49b   :  { %v1615_v54 = vmax.f32 %v1611_v61, 0.0  ;;  %v1617_v25 = vmax.f32 %v1613_v45, 0.0 }
 0x49c   :  { %v1616_v17 = vmax.f32 %v1612_v49, 0.0  ;;  %v1618_v58 = vmax.f32 %v1614_v16, 0.0 }
 0x49d   :  { %v1623_v3 = vadd.f32 1e-05, %v1615_v54  ;;  %v1625_v62 = vadd.f32 1e-05, %v1617_v25 }
 0x49e   :  { %v1624_v15 = vadd.f32 1e-05, %v1616_v17  ;;  %v1626_v19 = vadd.f32 1e-05, %v1618_v58 }
 0x49f   :  { %2126 = vrsqrt.f32 %v1623_v3 }
 0x4a0   :  { %2128 = vrsqrt.f32 %v1625_v62 }
 0x4a1   :  { %2130 = vrsqrt.f32 %v1624_v15 }
 0x4a2   :  { %2132 = vrsqrt.f32 %v1626_v19 }
 0x4a9   :  { %v2127_v1 = vpop.eup %2126 }
 0x4aa   :  { %v2129_v57 = vpop.eup %2128 }
 0x4ab   :  { %v2131_v41 = vpop.eup %2130 }
 0x4ac   :  { %v2133_v0 = vpop.eup %2132  ;;  %v1635_v59 = vcombine.low %v2127_v1, %v2131_v41 }
 0x4ad   :  { %v1636_v38 = vcombine.low %v2129_v57, %v2133_v0 }
 0x4ae   :  { %v1643_v4 = vrot.slane %v1635_v59, %v2430_v21 }
 0x4af   :  { %v1650_v12 = vrot.slane %v1636_v38, %v2430_v21 }
 0x4b1   :  { %v1651_v55 = vcombine.low %v1643_v4, %v1650_v12 }
 0x4b3   :  { %v1658_v20 = vrot.slane %v1651_v55, %v2430_v21 }
 0x4b5   :  { %v1660_v10 = vmul.f32 %v1658_v20, %v1620_v39 }
 0x4b7   :  { %v1665_v14 = vrot.slane %v1660_v10, %v2435_v30  ;;  %v1669_v51 = vrot.slane %v1660_v10, %v2439_v32  ;;  %v1673_v9 = vrot.slane %v1660_v10, %v2442_v33  ;;  %v1677_v37 = vrot.slane %v1660_v10, %v2445_v34 }
 0x4b9   :  { %v1682_v8 = vmul.f32 %v1665_v14, %v1599_v23  ;;  %v1683_v7 = vmul.f32 %v1669_v51, %v1600_v29  ;;  %v1684_v11 = vmul.f32 %v1673_v9, %v1601_v27  ;;  %v1685_v24 = vmul.f32 %v1677_v37, %v1602_v36 }
 0x4ba   :  { %v1716_v52 = vmul.f32 %v1665_v14, %v2644_v47  ;;  %v1717_v53 = vmul.f32 %v1669_v51, %v2652_v22  ;;  %v1718_v6 = vmul.f32 %v1673_v9, %v2646_v5  ;;  %v1719_v18 = vmul.f32 %v1677_v37, %v2654_v63  ;;  %v1622_v22 = vld [vmem:[#allocation11 + $0x5] ss:$8 sm:$0xf] }
 0x4bb   :  { %v1690_v26 = vcombine.low %v1682_v8, %v1683_v7  ;;  %v1691_v28 = vcombine.low %v1684_v11, %v1685_v24  ;;  %v1720_v31 = vmul.f32 %v1665_v14, %v2660_v46  ;;  %v1721_v42 = vmul.f32 %v1669_v51, %v2668_v40 }
 0x4bc   :  { %v1722_v43 = vmul.f32 %v1673_v9, %v2662_v13  ;;  %v1723_v23 = vmul.f32 %v1677_v37, %v2670_v2 }
 0x4bd   :  { %v1698_v27 = vrot.slane %v1690_v26, %v2430_v21  ;;  %v1705_v47 = vrot.slane %v1691_v28, %v2430_v21 }
 0x4bf   :  { %v1706_v29 = vcombine.low %v1698_v27, %v1705_v47 }
 0x4c1   :  { %v1713_v5 = vrot.slane %v1706_v29, %v2430_v21 }
 0x4c3   :  { %v1715_v36 = vsub.f32 %v1622_v22, %v1713_v5 }
 0x4c5   :  { %v1728_v63 = vrot.slane %v1715_v36, %v2435_v30  ;;  %v1732_v44 = vrot.slane %v1715_v36, %v2439_v32  ;;  %v1736_v46 = vrot.slane %v1715_v36, %v2442_v33  ;;  %v1740_v40 = vrot.slane %v1715_v36, %v2445_v34 }
 0x4c7   :  { %v2702_v13 = vadd.f32 %v1728_v63, %v1716_v52  ;;  %v1746_v2 = vadd.f32 %v1732_v44, %v1717_v53  ;;  %v2704_v48 = vadd.f32 %v1736_v46, %v1718_v6  ;;  %v1748_v50 = vadd.f32 %v1740_v40, %v1719_v18 }
 0x4c8   :  { %v2706_v56 = vadd.f32 %v1728_v63, %v1720_v31  ;;  %v1750_v35 = vadd.f32 %v1732_v44, %v1721_v42  ;;  %v2708_v60 = vadd.f32 %v1736_v46, %v1722_v43  ;;  %v1752_v21 = vadd.f32 %v1740_v40, %v1723_v23 }
 0x4c9   :  { %v2711_v30 = vmul.f32 0.01, %v2702_v13  ;;  %v1754_v32 = vmul.f32 0.01, %v1746_v2  ;;  %v2714_v33 = vmul.f32 0.01, %v2704_v48 }
 0x4ca   :  { %v1756_v34 = vmul.f32 0.01, %v1748_v50  ;;  %v2717_v61 = vmul.f32 0.01, %v2706_v56  ;;  %v1758_v45 = vmul.f32 0.01, %v1750_v35 }
 0x4cb   :  { %v2720_v49 = vmul.f32 0.01, %v2708_v60  ;;  %v1760_v16 = vmul.f32 0.01, %v1752_v21  ;;  %v1761_v54 = vmax.f32 %v2702_v13, %v2711_v30  ;;  %v1762_v25 = vmax.f32 %v1746_v2, %v1754_v32 }
 0x4cc   :  { %v1763_v17 = vmax.f32 %v2704_v48, %v2714_v33  ;;  %v1764_v58 = vmax.f32 %v1748_v50, %v1756_v34  ;;  %v1765_v3 = vmax.f32 %v2706_v56, %v2717_v61  ;;  %v1766_v62 = vmax.f32 %v1750_v35, %v1758_v45 }
 0x4cd   :  { %v1767_v15 = vmax.f32 %v2708_v60, %v2720_v49  ;;  %v1768_v19 = vmax.f32 %v1752_v21, %v1760_v16 }
 0x4ce   :  { %2252 = dma.done.wait [#allocation5 + $0x2], 4096 }
 0x4cf   :  { %2253 = vsyncadd [#allocation5 + $0x2], 4294963200  ;;  %v1773_v1 = vpack.c.bf16 %v1766_v62, %v1762_v25  ;;  %v1775_v57 = vpack.c.bf16 %v1768_v19, %v1764_v58  ;;  %v1784_v41 = vld [vmem:[#allocation4 + $0x40] sm:$0xff]  ;;  %v1785_v4 = vld [vmem:[#allocation4 + $0x48] sm:$0xff]  ;;  %v1772_v5 = vpack.c.bf16 %v1765_v3, %v1761_v54  ;;  %v1774_v36 = vpack.c.bf16 %v1767_v15, %v1763_v17  ;;  %s2276_s15 = smov [#allocation12]  }
 0x4d0   :  { %v1800_v0 = vld [vmem:[#allocation4 + $0xc0] sm:$0xff]  ;;  %1979 = vmatprep.subr.bf16.mxu0 %v1784_v41  ;;  %v1801_v12 = vld [vmem:[#allocation4 + $0xc8] sm:$0xff]  ;;  %v1786_v20 = vld [vmem:[#allocation4 + $0x50] sm:$0xff]  ;;  %s1904_s16 = sshll.u32 %s2276_s15, 4  ;;  %s1905_s16 = int_to_ptr.vmem [resolvable:$true] %s1904_s16 }
 0x4d1   :  { %1847 = vmatprep.mubr.bf16.mxu0 %v1773_v1  ;;  %1888 = vmatprep.mubr.bf16.mxu1 %v1775_v57  ;;  %v1776_v59 = vld [vmem:[#allocation4] sm:$0xff]  ;;  %v1777_v55 = vld [vmem:[#allocation4 + $0x8] sm:$0xff]  ;;  %v1802_v10 = vld [vmem:[#allocation4 + $0xd0] sm:$0xff]  ;;  %p2227_p5 = scmp.lt.s32.totalorder %s1905_s16, %s1905_s16 }
 0x4d2   :  { %2001 = vmatprep.subr.bf16.mxu1 %v1800_v0  ;;  %v1792_v38 = vld [vmem:[#allocation4 + $0x80] sm:$0xff]  ;;  %1980 = vmatpush3.bf16.msra.mxu0 %v1776_v59  ;;  %v1793_v39 = vld [vmem:[#allocation4 + $0x88] sm:$0xff]  ;;  %v1778_v14 = vld [vmem:[#allocation4 + $0x10] sm:$0xff] }
 0x4d3   :  { %2002 = vmatpush3.bf16.msra.mxu1 %v1792_v38  ;;  %1981 = vmatprep.subr.bf16.mxu0 %v1785_v4  ;;  %v1794_v51 = vld [vmem:[#allocation4 + $0x90] sm:$0xff]  ;;  %v1787_v9 = vld [vmem:[#allocation4 + $0x58] sm:$0xff]  ;;  %v1788_v11 = vld [vmem:[#allocation4 + $0x60] sm:$0xff] }
 0x4d4   :  { %2003 = vmatprep.subr.bf16.mxu1 %v1801_v12  ;;  %v1803_v37 = vld [vmem:[#allocation4 + $0xd8] sm:$0xff]  ;;  %v1804_v24 = vld [vmem:[#allocation4 + $0xe0] sm:$0xff]  ;;  %v1789_v6 = vld [vmem:[#allocation4 + $0x68] sm:$0xff] }
 0x4d5   :  { %v1779_v8 = vld [vmem:[#allocation4 + $0x18] sm:$0xff]  ;;  %v1780_v52 = vld [vmem:[#allocation4 + $0x20] sm:$0xff]  ;;  %v1805_v18 = vld [vmem:[#allocation4 + $0xe8] sm:$0xff] }
 0x4d6   :  { %1982 = vmatpush3.bf16.msra.mxu0 %v1777_v55  ;;  %v1795_v7 = vld [vmem:[#allocation4 + $0x98] sm:$0xff]  ;;  %v1796_v53 = vld [vmem:[#allocation4 + $0xa0] sm:$0xff]  ;;  %v1781_v26 = vld [vmem:[#allocation4 + $0x28] sm:$0xff] }
 0x4d7   :  { %2004 = vmatpush3.bf16.msra.mxu1 %v1793_v39  ;;  %1983 = vmatprep.subr.bf16.mxu0 %v1786_v20  ;;  %v1797_v28 = vld [vmem:[#allocation4 + $0xa8] sm:$0xff]  ;;  %v1790_v31 = vld [vmem:[#allocation4 + $0x70] sm:$0xff]  ;;  %v1791_v27 = vld [vmem:[#allocation4 + $0x78] sm:$0xff] }
 0x4d8   :  { %2005 = vmatprep.subr.bf16.mxu1 %v1802_v10  ;;  %v1806_v42 = vld [vmem:[#allocation4 + $0xf0] sm:$0xff]  ;;  %v1807_v47 = vld [vmem:[#allocation4 + $0xf8] sm:$0xff]  ;;  %v1975_v46 = vld [vmem:[%s2764_s5] ss:$0 sm:$0xff]  ;;  %s2222_s5 = scalar_lea.vmem %s1905_s16, 256 }
 0x4d9   :  { %v1782_v43 = vld [vmem:[#allocation4 + $0x30] sm:$0xff]  ;;  %v1783_v29 = vld [vmem:[#allocation4 + $0x38] sm:$0xff]  ;;  %p2223_p4 = scmp.ne.s32.totalorder %s1905_s16, %s2222_s5  ;;  %p2228_p6 = scmp.lt.s32.totalorder %s2222_s5, %s2222_s5 }
 0x4da   :  { %1984 = vmatpush3.bf16.msra.mxu0 %v1778_v14  ;;  %v1798_v23 = vld [vmem:[#allocation4 + $0xb0] sm:$0xff]  ;;  %v1799_v22 = vld [vmem:[#allocation4 + $0xb8] sm:$0xff] }
 0x4db   :  { %2006 = vmatpush3.bf16.msra.mxu1 %v1794_v51  ;;  %1985 = vmatprep.subr.bf16.mxu0 %v1787_v9  ;;  %p2229_p7 = por %p2228_p6, %p2227_p5 }
 0x4dc   :  { %2007 = vmatprep.subr.bf16.mxu1 %v1803_v37 }
 0x4dd   :  { %p2230_p8 = pnand %p2229_p7, %p2223_p4 }
 0x4de   :  { %1986 = vmatpush3.bf16.msra.mxu0 %v1779_v8 }
 0x4df   :  { %2008 = vmatpush3.bf16.msra.mxu1 %v1795_v7  ;;  %1987 = vmatprep.subr.bf16.mxu0 %v1788_v11 }
 0x4e0   :  { %2009 = vmatprep.subr.bf16.mxu1 %v1804_v24 }
 0x4e2   :  { %1988 = vmatpush3.bf16.msra.mxu0 %v1780_v52 }
 0x4e3   :  { %2010 = vmatpush3.bf16.msra.mxu1 %v1796_v53  ;;  %1989 = vmatprep.subr.bf16.mxu0 %v1789_v6 }
 0x4e4   :  { %2011 = vmatprep.subr.bf16.mxu1 %v1805_v18 }
 0x4e6   :  { %1990 = vmatpush3.bf16.msra.mxu0 %v1781_v26 }
 0x4e7   :  { %2012 = vmatpush3.bf16.msra.mxu1 %v1797_v28  ;;  %1991 = vmatprep.subr.bf16.mxu0 %v1790_v31 }
 0x4e8   :  { %2013 = vmatprep.subr.bf16.mxu1 %v1806_v42 }
 0x4ea   :  { %1992 = vmatpush3.bf16.msra.mxu0 %v1782_v43 }
 0x4eb   :  { %2014 = vmatpush3.bf16.msra.mxu1 %v1798_v23  ;;  %1993 = vmatprep.subr.bf16.mxu0 %v1791_v27 }
 0x4ec   :  { %2015 = vmatprep.subr.bf16.mxu1 %v1807_v47 }
 0x4ee   :  { %1994 = vmatpush3.bf16.msra.mxu0 %v1783_v29 }
 0x4ef   :  { %2016 = vmatpush3.bf16.msra.mxu1 %v1799_v22 }
 0x4f1   :  { %1848 = vmatmul.mubr.bf16.vlgmr.msra.gmra.mrb[12].mxu0 %v1772_v5 }
 0x4f2   :  { %1889 = vmatmul.mubr.bf16.vlgmr.msra.gmra.mrb[12].mxu1 %v1774_v36 }
 0x5c4   :  { %v1995_v63 = vpop.f32.mrb[12].mxu0 }
 0x5c5   :  { %v2017_v44 = vpop.f32.mrb[12].mxu1  ;;  %v1996_v40 = vpop.f32.mrb[13].mxu0 }
 0x5c6   :  { %v2018_v13 = vpop.f32.mrb[13].mxu1  ;;  %v1997_v2 = vadd.f32 %v1996_v40, %v1995_v63  ;;  %v1998_v56 = vpop.f32.mrb[14].mxu0 }
 0x5c7   :  { %v2019_v50 = vadd.f32 %v2018_v13, %v2017_v44  ;;  %v2020_v48 = vpop.f32.mrb[14].mxu1  ;;  %v1999_v35 = vpop.f32.mrb[15].mxu0 }
 0x5c8   :  { %v2021_v21 = vpop.f32.mrb[15].mxu1  ;;  %v1850_v60 = vadd.f32 %v1997_v2, %v1975_v46  ;;  %v2000_v30 = vadd.f32 %v1999_v35, %v1998_v56 }
 0x5c9   :  { %v2022_v32 = vadd.f32 %v2021_v21, %v2020_v48 }
 0x5ca   :  { %v1891_v33 = vadd.f32 %v2019_v50, %v1850_v60  ;;  %v1853_v34 = vadd.f32 %v2000_v30, %v1975_v46 }
 0x5cc   :  { %1897 = vst [vmem:[#allocation12] sm:$0xff] %v1891_v33  ;;  %v1894_v61 = vadd.f32 %v2022_v32, %v1853_v34 }
 0x5ce   :  { %1898 = vst [vmem:[#allocation12 + $0x8] sm:$0xff] %v1894_v61 }
 0x5cf   :  { %2233 = shalt.err (!%p2230_p8)
}
 0x5d0   :  { %s2234_s20 = scalar_lea.hbm %s2765_s6, 256 }
 0x5d1   :  { %p2235_p9 = scmp.ne.s32.totalorder %s2765_s6, %s2234_s20  ;;  %p2238_p10 = scmp.lt.u32.totalorder %s2234_s20, %s2765_s6 }
 0x5d3   :  { %p2240_p11 = pnand %p2238_p10, %p2235_p9 }
 0x5d5   :  { %2243 = shalt.err (!%p2240_p11)
}
 0x5d6   :  { %s2277_s26 = smov 8  }
 0x5d7   :  { %1910 = dma.vmem_to_hbm [thread:$0]  %s1905_s16, 256, %s2765_s6, [#allocation8], %s2266_s17, %s2266_s17, %s2277_s26  }
 0x5d8   :  { %2254 = dma.done.wait [#allocation8], 256  }
 0x5d9   :  { %2255 = vsyncadd [#allocation8], 4294967040 }
 0x5da   :  { %1914 = vsyncpa [#allocation7], 1 }
 0x5db   :  { %1915 = vsyncpa [#allocation10], 1 }
 0x5dc   :  { %1916 = vsyncpa [#allocation8], 1 }
 0x5dd   :  { %1917 = vsyncmov [#allocation5] }
 0x5e0   :  { %s1918_s29 = vpop.sfrf %1917 }
 0x5e1   :  { %p1976_p12 = scmp.ne.s32.totalorder %s1918_s29, 0 }
 0x5e3   :  { %1922 = shalt.err (%p1976_p12)  }
 0x5e4   :  { %1924 = vsyncmov [#allocation5 + $0x1] }
 0x5e7   :  { %s1925_s30 = vpop.sfrf %1924 }
 0x5e8   :  { %p1977_p13 = scmp.ne.s32.totalorder %s1925_s30, 0 }
 0x5ea   :  { %1929 = shalt.err (%p1977_p13)  }
 0x5eb   :  { %1931 = vsyncmov [#allocation5 + $0x2] }
 0x5ee   :  { %s1932_s3 = vpop.sfrf %1931 }
 0x5ef   :  { %p1978_p0 = scmp.ne.s32.totalorder %s1932_s3, 0 }
 0x5f1   :  { %1936 = shalt.err (%p1978_p0)  }

</bundles_post_ra>
